<compile_context>
chip_gen: v6e
topology: v6e:2x2x1
jax: 0.10.0
libtpu: 0.0.40
codegen_flags: <defaults>
</compile_context>

<pallas_src>
import functools

import jax
import jax.numpy as jnp
from jax.experimental import pallas as pl
from jax.experimental.pallas import tpu as pltpu

_BN_EPS = 1e-5


# ----------------------------------------------------------------------------
# Fused BasicBlock kernel (one batch image per grid step)
# ----------------------------------------------------------------------------
def _basic_block_kernel(x_ref, w1_ref, s1_ref, b1_ref, w2_ref, s2_ref, b2_ref,
                        o_ref, xp_ref, h1p_ref, *, h, w, cin, planes):
    """conv3x3+BN1+ReLU -> conv3x3+BN2 (+identity residual) + ReLU, fully fused.

    x_ref   : (h, w, cin) f32      input image (batch dim squeezed away)
    w1_ref  : (9*cin, planes) bf16 conv1 weights, taps folded into K
    w2_ref  : (9*planes, planes) bf16 conv2 weights, taps folded into K
    s*/b*   : (1, planes) f32      folded eval-mode BatchNorm scale / shift
    o_ref   : (h, w, planes) f32   output (true channels only)
    xp_ref  : (h+2, w+2, cin) bf16 VMEM scratch, zero-padded input
    h1p_ref : (h+2, w+2, planes) bf16 VMEM scratch, zero-padded conv1 output
    """
    f32 = jnp.float32
    bf16 = jnp.bfloat16

    # --- in-kernel halo zero-padding + f32->bf16 cast (no wrapper HBM pass) --
    xp_ref[...] = jnp.zeros_like(xp_ref)
    xp_ref[1:h + 1, 1:w + 1, :] = x_ref[...].astype(bf16)
    h1p_ref[...] = jnp.zeros_like(h1p_ref)

    zrow = jnp.zeros((1, planes), bf16)

    def make_patch(src_ref, i):
        # Build the K-folded patch for output row i:
        #   patch[j, dj*3*C + di*C + c] = src[i+di, j+dj, c]
        # using only leading-axis dynamic loads, sublane slices and lane concats
        # (no strided relayout copies).
        band = jnp.concatenate(
            [src_ref[i], src_ref[i + 1], src_ref[i + 2]], axis=-1)    # (w+2, 3*C)
        return jnp.concatenate(
            [band[0:w], band[1:w + 1], band[2:w + 2]], axis=-1)       # (w, 9*C)

    # ------------------ conv1 + BN1 + ReLU -> bf16 VMEM scratch ---------------
    w1 = w1_ref[...]
    s1 = s1_ref[...]
    b1 = b1_ref[...]

    def conv1_row(i, carry):
        patch = make_patch(xp_ref, i)                                  # (w, 9*cin)
        y = jnp.dot(patch, w1, preferred_element_type=f32)             # (w, planes)
        y = jnp.maximum(y * s1 + b1, 0.0)
        # store padded row: h1p[i+1, 0]=0, h1p[i+1, 1:w+1]=y, h1p[i+1, w+1]=0
        h1p_ref[i + 1] = jnp.concatenate([zrow, y.astype(bf16), zrow], axis=0)
        return carry

    jax.lax.fori_loop(0, h, conv1_row, 0)

    # --------- conv2 + BN2 + identity residual + ReLU -> HBM output ----------
    w2 = w2_ref[...]
    s2 = s2_ref[...]
    b2 = b2_ref[...]

    def conv2_row(i, carry):
        patch = make_patch(h1p_ref, i)                                 # (w, 9*planes)
        y = jnp.dot(patch, w2, preferred_element_type=f32)             # (w, planes)
        y = y * s2 + b2
        res = x_ref[i]                                                 # (w, cin) f32
        y = jnp.maximum(y + res, 0.0)
        o_ref[i] = y.astype(o_ref.dtype)
        return carry

    jax.lax.fori_loop(0, h, conv2_row, 0)


# ----------------------------------------------------------------------------
# Parameter packing helpers
# ----------------------------------------------------------------------------
def _bn_fold(gamma, beta, mean, var):
    scale = gamma / jnp.sqrt(var + _BN_EPS)
    return scale, beta - mean * scale


def _row(v):
    return v.reshape(1, -1).astype(jnp.float32)


def _pack_conv3x3(w):
    """PyTorch (Cout, Cin, 3, 3) -> (3*3*Cin, Cout) bf16, K ordered (dj, di, ci)
    to match the in-kernel patch layout."""
    cout, cin, kh, kw = w.shape
    assert kh == 3 and kw == 3, w.shape
    wt = jnp.transpose(w, (3, 2, 1, 0)).reshape(kw * kh * cin, cout)
    return wt.astype(jnp.bfloat16)


# ----------------------------------------------------------------------------
# BasicBlock forward (NCHW at the module boundary, NHWC inside)
# ----------------------------------------------------------------------------
def basic_block_forward(x_nchw, p, *, stride=1, has_downsample=False):
    # TODO(synk): only the stride=1 / identity-residual configuration is fused.
    assert stride == 1 and not has_downsample
    n, cin, h, w = x_nchw.shape
    planes = p["conv1_w"].shape[0]
    assert cin == planes, "identity residual requires inplanes == planes"

    x = jnp.transpose(x_nchw, (0, 2, 3, 1))            # NCHW -> NHWC (f32)

    s1, t1 = _bn_fold(p["bn1_gamma"], p["bn1_beta"], p["bn1_mean"], p["bn1_var"])
    s2, t2 = _bn_fold(p["bn2_gamma"], p["bn2_beta"], p["bn2_mean"], p["bn2_var"])
    w1 = _pack_conv3x3(p["conv1_w"])                    # (9*cin, planes)
    w2 = _pack_conv3x3(p["conv2_w"])                    # (9*planes, planes)

    out = pl.pallas_call(
        functools.partial(_basic_block_kernel, h=h, w=w, cin=cin, planes=planes),
        out_shape=jax.ShapeDtypeStruct((n, h, w, planes), jnp.float32),
        grid=(n,),
        in_specs=[
            pl.BlockSpec((pl.Squeezed(), h, w, cin), lambda b: (b, 0, 0, 0)),
            pl.BlockSpec((9 * cin, planes), lambda b: (0, 0)),
            pl.BlockSpec((1, planes), lambda b: (0, 0)),
            pl.BlockSpec((1, planes), lambda b: (0, 0)),
            pl.BlockSpec((9 * planes, planes), lambda b: (0, 0)),
            pl.BlockSpec((1, planes), lambda b: (0, 0)),
            pl.BlockSpec((1, planes), lambda b: (0, 0)),
        ],
        out_specs=pl.BlockSpec((pl.Squeezed(), h, w, planes),
                               lambda b: (b, 0, 0, 0)),
        scratch_shapes=[
            pltpu.VMEM((h + 2, w + 2, cin), jnp.bfloat16),     # padded input
            pltpu.VMEM((h + 2, w + 2, planes), jnp.bfloat16),  # padded conv1 out
        ],
        compiler_params=pltpu.CompilerParams(dimension_semantics=("parallel",)),
    )(x, w1, _row(s1), _row(t1), w2, _row(s2), _row(t2))

    return jnp.transpose(out, (0, 3, 1, 2))             # NHWC -> NCHW


# ----------------------------------------------------------------------------
# Pure-JAX reference (for correctness check)
# ----------------------------------------------------------------------------
def _reference_basic_block(x, p, *, stride=1, has_downsample=False):
    def conv(x, w, s, pad):
        return jax.lax.conv_general_dilated(
            x, w, (s, s), ((pad, pad), (pad, pad)),
            dimension_numbers=("NCHW", "OIHW", "NCHW"))

    def bn(x, g, b, m, v):
        g, b, m, v = (a[None, :, None, None] for a in (g, b, m, v))
        return (x - m) / jnp.sqrt(v + _BN_EPS) * g + b

    out = conv(x, p["conv1_w"], stride, 1)
    out = jax.nn.relu(bn(out, p["bn1_gamma"], p["bn1_beta"],
                         p["bn1_mean"], p["bn1_var"]))
    out = conv(out, p["conv2_w"], 1, 1)
    out = bn(out, p["bn2_gamma"], p["bn2_beta"], p["bn2_mean"], p["bn2_var"])
    if has_downsample:
        res = conv(x, p["ds_w"], stride, 0)
        res = bn(res, p["ds_gamma"], p["ds_beta"], p["ds_mean"], p["ds_var"])
    else:
        res = x
    return jax.nn.relu(out + res)


# ----------------------------------------------------------------------------
# Deterministic parameter init (PyTorch tensor layouts)
# ----------------------------------------------------------------------------
def init_params(key, inplanes=32, planes=32):
    ks = jax.random.split(key, 10)
    std1 = (2.0 / (9 * inplanes)) ** 0.5
    std2 = (2.0 / (9 * planes)) ** 0.5
    return {
        "conv1_w": jax.random.normal(ks[0], (planes, inplanes, 3, 3), jnp.float32) * std1,
        "bn1_gamma": 1.0 + 0.1 * jax.random.normal(ks[1], (planes,), jnp.float32),
        "bn1_beta": 0.1 * jax.random.normal(ks[2], (planes,), jnp.float32),
        "bn1_mean": 0.1 * jax.random.normal(ks[3], (planes,), jnp.float32),
        "bn1_var": jax.random.uniform(ks[4], (planes,), jnp.float32, 0.5, 1.5),
        "conv2_w": jax.random.normal(ks[5], (planes, planes, 3, 3), jnp.float32) * std2,
        "bn2_gamma": 1.0 + 0.1 * jax.random.normal(ks[6], (planes,), jnp.float32),
        "bn2_beta": 0.1 * jax.random.normal(ks[7], (planes,), jnp.float32),
        "bn2_mean": 0.1 * jax.random.normal(ks[8], (planes,), jnp.float32),
        "bn2_var": jax.random.uniform(ks[9], (planes,), jnp.float32, 0.5, 1.5),
    }


if __name__ == "__main__":
    key = jax.random.PRNGKey(0)
    pkey, xkey = jax.random.split(key)

    inplanes = planes = 32          # identity residual: stride=1, downsample=None
    params = init_params(pkey, inplanes=inplanes, planes=planes)
    x = jax.random.normal(xkey, (2, inplanes, 16, 16), jnp.float32)

    fwd = jax.jit(functools.partial(basic_block_forward,
                                    stride=1, has_downsample=False))
    out = jax.block_until_ready(fwd(x, params))

    assert out.shape == (2, planes, 16, 16), out.shape
    assert bool(jnp.all(jnp.isfinite(out)))

    ref = _reference_basic_block(x, params, stride=1, has_downsample=False)
    max_err = float(jnp.max(jnp.abs(out - ref)))
    assert max_err < 0.15, max_err   # loose tolerance: bf16 feed to the MXU

    print("KERNEL_OK")
</pallas_src>

<mosaic_0001>
module attributes {stable_mosaic.version = 11 : i64} {
  func.func @_basic_block_kernel(%arg0: i32, %arg1: memref<1x16x16x32xf32, #tpu.memory_space<vmem>>, %arg2: memref<288x32xbf16, #tpu.memory_space<vmem>>, %arg3: memref<1x32xf32, #tpu.memory_space<vmem>>, %arg4: memref<1x32xf32, #tpu.memory_space<vmem>>, %arg5: memref<288x32xbf16, #tpu.memory_space<vmem>>, %arg6: memref<1x32xf32, #tpu.memory_space<vmem>>, %arg7: memref<1x32xf32, #tpu.memory_space<vmem>>, %arg8: memref<1x16x16x32xf32, #tpu.memory_space<vmem>>, %arg9: memref<18x18x32xbf16, #tpu.memory_space<vmem>>, %arg10: memref<18x18x32xbf16, #tpu.memory_space<vmem>>) attributes {dimension_semantics = [#tpu.dimension_semantics<parallel>], iteration_bounds = array<i64: 2>, scalar_prefetch = 0 : i64, scratch_operands = 2 : i64, tpu.core_type = #tpu.core_type<tc>, window_params = [{transform_indices = @transform_0, window_bounds = array<i64: 1, 16, 16, 32>}, {pipeline_mode = #tpu.pipeline_mode<synchronous>, transform_indices = @transform_1, window_bounds = array<i64: 288, 32>}, {pipeline_mode = #tpu.pipeline_mode<synchronous>, transform_indices = @transform_2, window_bounds = array<i64: 1, 32>}, {pipeline_mode = #tpu.pipeline_mode<synchronous>, transform_indices = @transform_3, window_bounds = array<i64: 1, 32>}, {pipeline_mode = #tpu.pipeline_mode<synchronous>, transform_indices = @transform_4, window_bounds = array<i64: 288, 32>}, {pipeline_mode = #tpu.pipeline_mode<synchronous>, transform_indices = @transform_5, window_bounds = array<i64: 1, 32>}, {pipeline_mode = #tpu.pipeline_mode<synchronous>, transform_indices = @transform_6, window_bounds = array<i64: 1, 32>}, {transform_indices = @transform_7, window_bounds = array<i64: 1, 16, 16, 32>}]} {
    %cst = arith.constant 0.000000e+00 : bf16
    %0 = vector.broadcast %cst : bf16 to vector<18x18x32xbf16>
    %c0 = arith.constant 0 : index
    %c0_0 = arith.constant 0 : index
    %c0_1 = arith.constant 0 : index
    %1 = vector.load %arg9[%c0, %c0_0, %c0_1] : memref<18x18x32xbf16, #tpu.memory_space<vmem>>, vector<18x18x32xbf16>
    tpu.vector_store %arg9[%c0, %c0_0, %c0_1], %0 {strides = array<i32>} : memref<18x18x32xbf16, #tpu.memory_space<vmem>>, vector<18x18x32xbf16>,
    %c0_2 = arith.constant 0 : index
    %c0_3 = arith.constant 0 : index
    %c0_4 = arith.constant 0 : index
    %c0_5 = arith.constant 0 : index
    %2 = vector.load %arg1[%c0_2, %c0_3, %c0_4, %c0_5] : memref<1x16x16x32xf32, #tpu.memory_space<vmem>>, vector<1x16x16x32xf32>
    %3 = vector.shape_cast %2 : vector<1x16x16x32xf32> to vector<16x16x32xf32>
    %4 = arith.truncf %3 : vector<16x16x32xf32> to vector<16x16x32xbf16>
    %c1 = arith.constant 1 : index
    %c1_6 = arith.constant 1 : index
    %c0_7 = arith.constant 0 : index
    %5 = vector.load %arg9[%c1, %c1_6, %c0_7] : memref<18x18x32xbf16, #tpu.memory_space<vmem>>, vector<16x16x32xbf16>
    tpu.vector_store %arg9[%c1, %c1_6, %c0_7], %4 {strides = array<i32>} : memref<18x18x32xbf16, #tpu.memory_space<vmem>>, vector<16x16x32xbf16>,
    %cst_8 = arith.constant 0.000000e+00 : bf16
    %6 = vector.broadcast %cst_8 : bf16 to vector<18x18x32xbf16>
    %c0_9 = arith.constant 0 : index
    %c0_10 = arith.constant 0 : index
    %c0_11 = arith.constant 0 : index
    %7 = vector.load %arg10[%c0_9, %c0_10, %c0_11] : memref<18x18x32xbf16, #tpu.memory_space<vmem>>, vector<18x18x32xbf16>
    tpu.vector_store %arg10[%c0_9, %c0_10, %c0_11], %6 {strides = array<i32>} : memref<18x18x32xbf16, #tpu.memory_space<vmem>>, vector<18x18x32xbf16>,
    %cst_12 = arith.constant 0.000000e+00 : bf16
    %8 = vector.broadcast %cst_12 : bf16 to vector<1x32xbf16>
    %c0_13 = arith.constant 0 : index
    %c0_14 = arith.constant 0 : index
    %9 = vector.load %arg2[%c0_13, %c0_14] : memref<288x32xbf16, #tpu.memory_space<vmem>>, vector<288x32xbf16>
    %c0_15 = arith.constant 0 : index
    %c0_16 = arith.constant 0 : index
    %10 = vector.load %arg3[%c0_15, %c0_16] : memref<1x32xf32, #tpu.memory_space<vmem>>, vector<1x32xf32>
    %c0_17 = arith.constant 0 : index
    %c0_18 = arith.constant 0 : index
    %11 = vector.load %arg4[%c0_17, %c0_18] : memref<1x32xf32, #tpu.memory_space<vmem>>, vector<1x32xf32>
    %c0_i32 = arith.constant 0 : i32
    %c16_i32 = arith.constant 16 : i32
    %12 = arith.addi %c0_i32, %c16_i32 : i32
    %c1_i32 = arith.constant 1 : i32
    scf.for %arg11 = %c0_i32 to %12 step %c1_i32  : i32 {
      %17 = arith.index_cast %arg11 : i32 to index
      %c0_30 = arith.constant 0 : index
      %c0_31 = arith.constant 0 : index
      %18 = vector.load %arg9[%17, %c0_30, %c0_31] : memref<18x18x32xbf16, #tpu.memory_space<vmem>>, vector<1x18x32xbf16>
      %19 = vector.shape_cast %18 : vector<1x18x32xbf16> to vector<18x32xbf16>
      %c1_i32_32 = arith.constant 1 : i32
      %20 = arith.addi %arg11, %c1_i32_32 : i32
      %21 = arith.index_cast %20 : i32 to index
      %c0_33 = arith.constant 0 : index
      %c0_34 = arith.constant 0 : index
      %22 = vector.load %arg9[%21, %c0_33, %c0_34] : memref<18x18x32xbf16, #tpu.memory_space<vmem>>, vector<1x18x32xbf16>
      %23 = vector.shape_cast %22 : vector<1x18x32xbf16> to vector<18x32xbf16>
      %c2_i32 = arith.constant 2 : i32
      %24 = arith.addi %arg11, %c2_i32 : i32
      %25 = arith.index_cast %24 : i32 to index
      %c0_35 = arith.constant 0 : index
      %c0_36 = arith.constant 0 : index
      %26 = vector.load %arg9[%25, %c0_35, %c0_36] : memref<18x18x32xbf16, #tpu.memory_space<vmem>>, vector<1x18x32xbf16>
      %27 = vector.shape_cast %26 : vector<1x18x32xbf16> to vector<18x32xbf16>
      %28 = tpu.concatenate %19, %23, %27 in 1 : vector<18x32xbf16>, vector<18x32xbf16>, vector<18x32xbf16> -> vector<18x96xbf16>
      %29 = vector.extract_strided_slice %28 {offsets = [0, 0], sizes = [16, 96], strides = [1, 1]} : vector<18x96xbf16> to vector<16x96xbf16>
      %30 = vector.extract_strided_slice %28 {offsets = [1, 0], sizes = [16, 96], strides = [1, 1]} : vector<18x96xbf16> to vector<16x96xbf16>
      %31 = vector.extract_strided_slice %28 {offsets = [2, 0], sizes = [16, 96], strides = [1, 1]} : vector<18x96xbf16> to vector<16x96xbf16>
      %32 = tpu.concatenate %29, %30, %31 in 1 : vector<16x96xbf16>, vector<16x96xbf16>, vector<16x96xbf16> -> vector<16x288xbf16>
      %cst_37 = arith.constant dense<0.000000e+00> : vector<16x32xf32>
      %33 = tpu.matmul %32, %9, %cst_37 {dimension_numbers = #tpu.dot_dimension_numbers<[1], [0], [0], [1], [0, 0, 1, 1], [], []>} : vector<16x288xbf16>, vector<288x32xbf16>, vector<16x32xf32> -> vector<16x32xf32>
      %34 = vector.broadcast %10 : vector<1x32xf32> to vector<16x32xf32>
      %35 = arith.mulf %33, %34 : vector<16x32xf32>
      %36 = vector.broadcast %11 : vector<1x32xf32> to vector<16x32xf32>
      %37 = arith.addf %35, %36 : vector<16x32xf32>
      %cst_38 = arith.constant 0.000000e+00 : f32
      %38 = vector.broadcast %cst_38 : f32 to vector<16x32xf32>
      %39 = arith.maximumf %37, %38 : vector<16x32xf32>
      %40 = arith.truncf %39 : vector<16x32xf32> to vector<16x32xbf16>
      %41 = tpu.concatenate %8, %40, %8 in 0 : vector<1x32xbf16>, vector<16x32xbf16>, vector<1x32xbf16> -> vector<18x32xbf16>
      %c1_i32_39 = arith.constant 1 : i32
      %42 = arith.addi %arg11, %c1_i32_39 : i32
      %43 = arith.index_cast %42 : i32 to index
      %c0_40 = arith.constant 0 : index
      %c0_41 = arith.constant 0 : index
      %44 = vector.load %arg10[%43, %c0_40, %c0_41] : memref<18x18x32xbf16, #tpu.memory_space<vmem>>, vector<1x18x32xbf16>
      %45 = vector.shape_cast %44 : vector<1x18x32xbf16> to vector<18x32xbf16>
      %46 = vector.shape_cast %41 : vector<18x32xbf16> to vector<1x18x32xbf16>
      tpu.vector_store %arg10[%43, %c0_40, %c0_41], %46 {strides = array<i32>} : memref<18x18x32xbf16, #tpu.memory_space<vmem>>, vector<1x18x32xbf16>,
    }
    %c16_i32_19 = arith.constant 16 : i32
    %c0_20 = arith.constant 0 : index
    %c0_21 = arith.constant 0 : index
    %13 = vector.load %arg5[%c0_20, %c0_21] : memref<288x32xbf16, #tpu.memory_space<vmem>>, vector<288x32xbf16>
    %c0_22 = arith.constant 0 : index
    %c0_23 = arith.constant 0 : index
    %14 = vector.load %arg6[%c0_22, %c0_23] : memref<1x32xf32, #tpu.memory_space<vmem>>, vector<1x32xf32>
    %c0_24 = arith.constant 0 : index
    %c0_25 = arith.constant 0 : index
    %15 = vector.load %arg7[%c0_24, %c0_25] : memref<1x32xf32, #tpu.memory_space<vmem>>, vector<1x32xf32>
    %c0_i32_26 = arith.constant 0 : i32
    %c16_i32_27 = arith.constant 16 : i32
    %16 = arith.addi %c0_i32_26, %c16_i32_27 : i32
    %c1_i32_28 = arith.constant 1 : i32
    scf.for %arg11 = %c0_i32_26 to %16 step %c1_i32_28  : i32 {
      %17 = arith.index_cast %arg11 : i32 to index
      %c0_30 = arith.constant 0 : index
      %c0_31 = arith.constant 0 : index
      %18 = vector.load %arg10[%17, %c0_30, %c0_31] : memref<18x18x32xbf16, #tpu.memory_space<vmem>>, vector<1x18x32xbf16>
      %19 = vector.shape_cast %18 : vector<1x18x32xbf16> to vector<18x32xbf16>
      %c1_i32_32 = arith.constant 1 : i32
      %20 = arith.addi %arg11, %c1_i32_32 : i32
      %21 = arith.index_cast %20 : i32 to index
      %c0_33 = arith.constant 0 : index
      %c0_34 = arith.constant 0 : index
      %22 = vector.load %arg10[%21, %c0_33, %c0_34] : memref<18x18x32xbf16, #tpu.memory_space<vmem>>, vector<1x18x32xbf16>
      %23 = vector.shape_cast %22 : vector<1x18x32xbf16> to vector<18x32xbf16>
      %c2_i32 = arith.constant 2 : i32
      %24 = arith.addi %arg11, %c2_i32 : i32
      %25 = arith.index_cast %24 : i32 to index
      %c0_35 = arith.constant 0 : index
      %c0_36 = arith.constant 0 : index
      %26 = vector.load %arg10[%25, %c0_35, %c0_36] : memref<18x18x32xbf16, #tpu.memory_space<vmem>>, vector<1x18x32xbf16>
      %27 = vector.shape_cast %26 : vector<1x18x32xbf16> to vector<18x32xbf16>
      %28 = tpu.concatenate %19, %23, %27 in 1 : vector<18x32xbf16>, vector<18x32xbf16>, vector<18x32xbf16> -> vector<18x96xbf16>
      %29 = vector.extract_strided_slice %28 {offsets = [0, 0], sizes = [16, 96], strides = [1, 1]} : vector<18x96xbf16> to vector<16x96xbf16>
      %30 = vector.extract_strided_slice %28 {offsets = [1, 0], sizes = [16, 96], strides = [1, 1]} : vector<18x96xbf16> to vector<16x96xbf16>
      %31 = vector.extract_strided_slice %28 {offsets = [2, 0], sizes = [16, 96], strides = [1, 1]} : vector<18x96xbf16> to vector<16x96xbf16>
      %32 = tpu.concatenate %29, %30, %31 in 1 : vector<16x96xbf16>, vector<16x96xbf16>, vector<16x96xbf16> -> vector<16x288xbf16>
      %cst_37 = arith.constant dense<0.000000e+00> : vector<16x32xf32>
      %33 = tpu.matmul %32, %13, %cst_37 {dimension_numbers = #tpu.dot_dimension_numbers<[1], [0], [0], [1], [0, 0, 1, 1], [], []>} : vector<16x288xbf16>, vector<288x32xbf16>, vector<16x32xf32> -> vector<16x32xf32>
      %34 = vector.broadcast %14 : vector<1x32xf32> to vector<16x32xf32>
      %35 = arith.mulf %33, %34 : vector<16x32xf32>
      %36 = vector.broadcast %15 : vector<1x32xf32> to vector<16x32xf32>
      %37 = arith.addf %35, %36 : vector<16x32xf32>
      %c0_38 = arith.constant 0 : index
      %38 = arith.index_cast %arg11 : i32 to index
      %c0_39 = arith.constant 0 : index
      %c0_40 = arith.constant 0 : index
      %39 = vector.load %arg1[%c0_38, %38, %c0_39, %c0_40] : memref<1x16x16x32xf32, #tpu.memory_space<vmem>>, vector<1x1x16x32xf32>
      %40 = vector.shape_cast %39 : vector<1x1x16x32xf32> to vector<16x32xf32>
      %41 = arith.addf %37, %40 : vector<16x32xf32>
      %cst_41 = arith.constant 0.000000e+00 : f32
      %42 = vector.broadcast %cst_41 : f32 to vector<16x32xf32>
      %43 = arith.maximumf %41, %42 : vector<16x32xf32>
      %c0_42 = arith.constant 0 : index
      %44 = arith.index_cast %arg11 : i32 to index
      %c0_43 = arith.constant 0 : index
      %c0_44 = arith.constant 0 : index
      %45 = vector.load %arg8[%c0_42, %44, %c0_43, %c0_44] : memref<1x16x16x32xf32, #tpu.memory_space<vmem>>, vector<1x1x16x32xf32>
      %46 = vector.shape_cast %45 : vector<1x1x16x32xf32> to vector<16x32xf32>
      %47 = vector.shape_cast %43 : vector<16x32xf32> to vector<1x1x16x32xf32>
      tpu.vector_store %arg8[%c0_42, %44, %c0_43, %c0_44], %47 {strides = array<i32>} : memref<1x16x16x32xf32, #tpu.memory_space<vmem>>, vector<1x1x16x32xf32>,
    }
    %c16_i32_29 = arith.constant 16 : i32
    return
  }
  func.func @transform_0(%arg0: i32) -> (i32, i32, i32, i32) {
    %c0_i32 = arith.constant 0 : i32
    %c0_i32_0 = arith.constant 0 : i32
    %c0_i32_1 = arith.constant 0 : i32
    %c0_i32_2 = arith.constant 0 : i32
    return %arg0, %c0_i32, %c0_i32_0, %c0_i32_1 : i32, i32, i32, i32
  }
  func.func @transform_1(%arg0: i32) -> (i32, i32) {
    %c0_i32 = arith.constant 0 : i32
    %c0_i32_0 = arith.constant 0 : i32
    %c0_i32_1 = arith.constant 0 : i32
    return %c0_i32, %c0_i32_0 : i32, i32
  }
  func.func @transform_2(%arg0: i32) -> (i32, i32) {
    %c0_i32 = arith.constant 0 : i32
    %c0_i32_0 = arith.constant 0 : i32
    %c0_i32_1 = arith.constant 0 : i32
    return %c0_i32, %c0_i32_0 : i32, i32
  }
  func.func @transform_3(%arg0: i32) -> (i32, i32) {
    %c0_i32 = arith.constant 0 : i32
    %c0_i32_0 = arith.constant 0 : i32
    %c0_i32_1 = arith.constant 0 : i32
    return %c0_i32, %c0_i32_0 : i32, i32
  }
  func.func @transform_4(%arg0: i32) -> (i32, i32) {
    %c0_i32 = arith.constant 0 : i32
    %c0_i32_0 = arith.constant 0 : i32
    %c0_i32_1 = arith.constant 0 : i32
    return %c0_i32, %c0_i32_0 : i32, i32
  }
  func.func @transform_5(%arg0: i32) -> (i32, i32) {
    %c0_i32 = arith.constant 0 : i32
    %c0_i32_0 = arith.constant 0 : i32
    %c0_i32_1 = arith.constant 0 : i32
    return %c0_i32, %c0_i32_0 : i32, i32
  }
  func.func @transform_6(%arg0: i32) -> (i32, i32) {
    %c0_i32 = arith.constant 0 : i32
    %c0_i32_0 = arith.constant 0 : i32
    %c0_i32_1 = arith.constant 0 : i32
    return %c0_i32, %c0_i32_0 : i32, i32
  }
  func.func @transform_7(%arg0: i32) -> (i32, i32, i32, i32) {
    %c0_i32 = arith.constant 0 : i32
    %c0_i32_0 = arith.constant 0 : i32
    %c0_i32_1 = arith.constant 0 : i32
    %c0_i32_2 = arith.constant 0 : i32
    return %arg0, %c0_i32, %c0_i32_0, %c0_i32_1 : i32, i32, i32, i32
  }
}

</mosaic_0001>

<bundles_post_ra>
// kernel: basic_block_forward.1
= control target key start
LH: loop header
LB: loop body
LE: loop exit
PB: predicated region body
PF: predicated region fallthrough
CT: control target
= control target key end

     0   :  { %12 = vsyncpa [#allocation5], 0  ;;  %s3253_s0 = inlined_call_operand.vmem [shape: f32[2,16,16,32], index: 0, kind: input, shape index: {}]   ;;  %s3254_s1 = inlined_call_operand.vmem [shape: bf16[288,32], index: 1, kind: input, shape index: {}]   ;;  %s3255_s2 = inlined_call_operand.vmem [shape: f32[1,32], index: 2, kind: input, shape index: {}]   ;;  %s3256_s3 = inlined_call_operand.vmem [shape: f32[1,32], index: 3, kind: input, shape index: {}]   ;;  %s3257_s4 = inlined_call_operand.vmem [shape: bf16[288,32], index: 4, kind: input, shape index: {}]   ;;  %s3258_s5 = inlined_call_operand.vmem [shape: f32[1,32], index: 5, kind: input, shape index: {}]   ;;  %s3259_s6 = inlined_call_operand.vmem [shape: f32[1,32], index: 6, kind: input, shape index: {}]   ;;  %s3260_s7 = inlined_call_operand.hbm [shape: f32[2,16,16,32], index: 7, kind: output, shape index: {}]  }
   0x1   :  { %14 = vsyncpa [#allocation5 + $0x1], 0  ;;  %s2230_s24 = smov 0   ;;  %s2232_s25 = smov 0  }
   0x2   :  { %s2234_s26 = smov 0   ;;  %s2236_s27 = smov 0  }
   0x3 LB: > { %s2251_s28 = sadd.s32 4294967295, %s2166_s27   ;;  %s1797_s29 = sadd.s32 4294967294, %s2166_s27   ;;  %s2166_s27 = sphi %s2236_s27, %s3288_s27   ;;  %s2162_s26 = sphi %s2234_s26, %s3287_s26   ;;  %s2158_s25 = sphi %s2232_s25, %s3286_s25   ;;  %s2154_s24 = sphi %s2230_s24, %s3285_s24  }
   0x4   : > { %s2255_s30 = sadd.s32 1, %s2166_s27   ;;  %s179_s8 = sadd.s32 1, %s2162_s26 }
   0x5   : > { %s176_s9 = ssub.s32 %s2166_s27, %s2255_s30  ;;  %p189_p0 = scmp.ne.s32.totalorder %s2162_s26, %s2158_s25 }
   0x6   : > { %p177_p1 = scmp.eq.s32.totalorder %s176_s9, 0  ;;  %p190_p2 = scmp.eq.s32.totalorder %s2251_s28, 1 }
   0x7   : > { %p195_p3 = scmp.ne.s32.totalorder %s2158_s25, %s2154_s24  ;;  %p196_p4 = scmp.eq.s32.totalorder %s1797_s29, 1 }
   0x8   : > { %s2266_s10 = scalar_select %p177_p1, %s2162_s26, %s179_s8  }
   0x9   : > { %p2268_p5 = por %p190_p2, %p189_p0  ;;  %p2272_p6 = por %p196_p4, %p195_p3 }
   0xa   : > { %p1800_p7 = scmp.ge.s32.totalorder %s2166_s27, 1  ;;  %p240_p8 = scmp.lt.s32.totalorder %s2166_s27, 3 }
   0xc   : > { %p241_p9 = pnand %p1800_p7, %p240_p8 }
   0xe   : > { %244 = sbr.rel (%p241_p9) target bundleno = 1083 (0x43b), region = 48 }
  0x13   : > { %vm278_vm0 = vcmask 257024   ;;  %vm281_vm1 = vcmask 253952   ;;  %v2281_v0 = vld [vmem:[%s3254_s1] sm:$0xf]  ;;  %s269_s15 = sand.u32 1, %s2158_s25   ;;  %v2176_v1 = vmov 0  }
  0x14   : > { %3265 = vst [vmem:[#allocation7_spill] sm:$0xff] %v2281_v0  ;;  %283 = vst.msk [vmem:[#allocation2 + $0xc] sm:$0xf] %vm278_vm0, %v2176_v1  ;;  %v2503_v2 = vld [vmem:[%s3254_s1 + $0x4] sm:$0xf]  ;;  %s2687_s8 = sshll.u32 %s269_s15, 8 }
  0x15   : > { %279 = vst.msk [vmem:[#allocation2] sm:$0xf] %vm278_vm0, %v2176_v1  ;;  %280 = vst.msk [vmem:[#allocation2 + $0x4] sm:$0xf] %vm278_vm0, %v2176_v1  ;;  %v2508_v3 = vld [vmem:[%s3254_s1 + $0x8] sm:$0xf] }
  0x16   : > { %284 = vst.msk [vmem:[#allocation2 + $0x10] sm:$0xf] %vm278_vm0, %v2176_v1  ;;  %286 = vst.msk [vmem:[#allocation2 + $0x18] sm:$0xf] %vm278_vm0, %v2176_v1  ;;  %v2513_v4 = vld [vmem:[%s3254_s1 + $0xc] sm:$0xf] }
  0x17   : > { %287 = vst.msk [vmem:[#allocation2 + $0x1c] sm:$0xf] %vm278_vm0, %v2176_v1  ;;  %289 = vst.msk [vmem:[#allocation2 + $0x24] sm:$0xf] %vm278_vm0, %v2176_v1  ;;  %v2518_v5 = vld [vmem:[%s3254_s1 + $0x10] sm:$0xf] }
  0x18   : > { %290 = vst.msk [vmem:[#allocation2 + $0x28] sm:$0xf] %vm278_vm0, %v2176_v1  ;;  %292 = vst.msk [vmem:[#allocation2 + $0x30] sm:$0xf] %vm278_vm0, %v2176_v1  ;;  %v2523_v6 = vld [vmem:[%s3254_s1 + $0x14] sm:$0xf] }
  0x19   : > { %293 = vst.msk [vmem:[#allocation2 + $0x34] sm:$0xf] %vm278_vm0, %v2176_v1  ;;  %295 = vst.msk [vmem:[#allocation2 + $0x3c] sm:$0xf] %vm278_vm0, %v2176_v1  ;;  %v2528_v7 = vld [vmem:[%s3254_s1 + $0x18] sm:$0xf] }
  0x1a   : > { %296 = vst.msk [vmem:[#allocation2 + $0x40] sm:$0xf] %vm278_vm0, %v2176_v1  ;;  %298 = vst.msk [vmem:[#allocation2 + $0x48] sm:$0xf] %vm278_vm0, %v2176_v1  ;;  %v2533_v8 = vld [vmem:[%s3254_s1 + $0x1c] sm:$0xf] }
  0x1b   : > { %299 = vst.msk [vmem:[#allocation2 + $0x4c] sm:$0xf] %vm278_vm0, %v2176_v1  ;;  %301 = vst.msk [vmem:[#allocation2 + $0x54] sm:$0xf] %vm278_vm0, %v2176_v1  ;;  %v2538_v9 = vld [vmem:[%s3254_s1 + $0x20] sm:$0xf] }
  0x1c   : > { %302 = vst.msk [vmem:[#allocation2 + $0x58] sm:$0xf] %vm278_vm0, %v2176_v1  ;;  %304 = vst.msk [vmem:[#allocation2 + $0x60] sm:$0xf] %vm278_vm0, %v2176_v1  ;;  %v2543_v10 = vld [vmem:[%s3254_s1 + $0x24] sm:$0xf] }
  0x1d   : > { %305 = vst.msk [vmem:[#allocation2 + $0x64] sm:$0xf] %vm278_vm0, %v2176_v1  ;;  %307 = vst.msk [vmem:[#allocation2 + $0x6c] sm:$0xf] %vm278_vm0, %v2176_v1  ;;  %v2548_v11 = vld [vmem:[%s3254_s1 + $0x28] sm:$0xf] }
  0x1e   : > { %308 = vst.msk [vmem:[#allocation2 + $0x70] sm:$0xf] %vm278_vm0, %v2176_v1  ;;  %310 = vst.msk [vmem:[#allocation2 + $0x78] sm:$0xf] %vm278_vm0, %v2176_v1  ;;  %v2553_v12 = vld [vmem:[%s3254_s1 + $0x2c] sm:$0xf] }
  0x1f   : > { %311 = vst.msk [vmem:[#allocation2 + $0x7c] sm:$0xf] %vm278_vm0, %v2176_v1  ;;  %313 = vst.msk [vmem:[#allocation2 + $0x84] sm:$0xf] %vm278_vm0, %v2176_v1  ;;  %v2558_v13 = vld [vmem:[%s3254_s1 + $0x30] sm:$0xf] }
  0x20   : > { %314 = vst.msk [vmem:[#allocation2 + $0x88] sm:$0xf] %vm278_vm0, %v2176_v1  ;;  %316 = vst.msk [vmem:[#allocation2 + $0x90] sm:$0xf] %vm278_vm0, %v2176_v1  ;;  %v2563_v14 = vld [vmem:[%s3254_s1 + $0x34] sm:$0xf] }
  0x21   : > { %317 = vst.msk [vmem:[#allocation2 + $0x94] sm:$0xf] %vm278_vm0, %v2176_v1  ;;  %319 = vst.msk [vmem:[#allocation2 + $0x9c] sm:$0xf] %vm278_vm0, %v2176_v1  ;;  %v2568_v15 = vld [vmem:[%s3254_s1 + $0x38] sm:$0xf] }
  0x22   : > { %320 = vst.msk [vmem:[#allocation2 + $0xa0] sm:$0xf] %vm278_vm0, %v2176_v1  ;;  %322 = vst.msk [vmem:[#allocation2 + $0xa8] sm:$0xf] %vm278_vm0, %v2176_v1  ;;  %v2573_v16 = vld [vmem:[%s3254_s1 + $0x3c] sm:$0xf] }
  0x23   : > { %323 = vst.msk [vmem:[#allocation2 + $0xac] sm:$0xf] %vm278_vm0, %v2176_v1  ;;  %325 = vst.msk [vmem:[#allocation2 + $0xb4] sm:$0xf] %vm278_vm0, %v2176_v1  ;;  %v2578_v17 = vld [vmem:[%s3254_s1 + $0x40] sm:$0xf] }
  0x24   : > { %326 = vst.msk [vmem:[#allocation2 + $0xb8] sm:$0xf] %vm278_vm0, %v2176_v1  ;;  %328 = vst.msk [vmem:[#allocation2 + $0xc0] sm:$0xf] %vm278_vm0, %v2176_v1  ;;  %v2583_v18 = vld [vmem:[%s3254_s1 + $0x44] sm:$0xf] }
  0x25   : > { %329 = vst.msk [vmem:[#allocation2 + $0xc4] sm:$0xf] %vm278_vm0, %v2176_v1  ;;  %331 = vst.msk [vmem:[#allocation2 + $0xcc] sm:$0xf] %vm278_vm0, %v2176_v1  ;;  %v2588_v19 = vld [vmem:[%s3254_s1 + $0x48] sm:$0xf] }
  0x26   : > { %332 = vst.msk [vmem:[#allocation2 + $0xd0] sm:$0xf] %vm278_vm0, %v2176_v1  ;;  %903 = vst.msk [vmem:[#allocation3] sm:$0xf] %vm278_vm0, %v2176_v1  ;;  %v2593_v20 = vld [vmem:[%s3254_s1 + $0x4c] sm:$0xf] }
  0x27   : > { %904 = vst.msk [vmem:[#allocation3 + $0x4] sm:$0xf] %vm278_vm0, %v2176_v1  ;;  %906 = vst.msk [vmem:[#allocation3 + $0xc] sm:$0xf] %vm278_vm0, %v2176_v1  ;;  %v2598_v21 = vld [vmem:[%s3254_s1 + $0x50] sm:$0xf] }
  0x28   : > { %907 = vst.msk [vmem:[#allocation3 + $0x10] sm:$0xf] %vm278_vm0, %v2176_v1  ;;  %909 = vst.msk [vmem:[#allocation3 + $0x18] sm:$0xf] %vm278_vm0, %v2176_v1  ;;  %v2603_v22 = vld [vmem:[%s3254_s1 + $0x54] sm:$0xf] }
  0x29   : > { %910 = vst.msk [vmem:[#allocation3 + $0x1c] sm:$0xf] %vm278_vm0, %v2176_v1  ;;  %912 = vst.msk [vmem:[#allocation3 + $0x24] sm:$0xf] %vm278_vm0, %v2176_v1  ;;  %v2608_v23 = vld [vmem:[%s3254_s1 + $0x58] sm:$0xf] }
  0x2a   : > { %913 = vst.msk [vmem:[#allocation3 + $0x28] sm:$0xf] %vm278_vm0, %v2176_v1  ;;  %915 = vst.msk [vmem:[#allocation3 + $0x30] sm:$0xf] %vm278_vm0, %v2176_v1  ;;  %v2613_v24 = vld [vmem:[%s3254_s1 + $0x5c] sm:$0xf] }
  0x2b   : > { %916 = vst.msk [vmem:[#allocation3 + $0x34] sm:$0xf] %vm278_vm0, %v2176_v1  ;;  %918 = vst.msk [vmem:[#allocation3 + $0x3c] sm:$0xf] %vm278_vm0, %v2176_v1  ;;  %v2618_v25 = vld [vmem:[%s3254_s1 + $0x60] sm:$0xf] }
  0x2c   : > { %919 = vst.msk [vmem:[#allocation3 + $0x40] sm:$0xf] %vm278_vm0, %v2176_v1  ;;  %921 = vst.msk [vmem:[#allocation3 + $0x48] sm:$0xf] %vm278_vm0, %v2176_v1  ;;  %v2623_v26 = vld [vmem:[%s3254_s1 + $0x64] sm:$0xf] }
  0x2d   : > { %922 = vst.msk [vmem:[#allocation3 + $0x4c] sm:$0xf] %vm278_vm0, %v2176_v1  ;;  %924 = vst.msk [vmem:[#allocation3 + $0x54] sm:$0xf] %vm278_vm0, %v2176_v1  ;;  %v2628_v27 = vld [vmem:[%s3254_s1 + $0x68] sm:$0xf] }
  0x2e   : > { %925 = vst.msk [vmem:[#allocation3 + $0x58] sm:$0xf] %vm278_vm0, %v2176_v1  ;;  %927 = vst.msk [vmem:[#allocation3 + $0x60] sm:$0xf] %vm278_vm0, %v2176_v1  ;;  %v2633_v28 = vld [vmem:[%s3254_s1 + $0x6c] sm:$0xf] }
  0x2f   : > { %928 = vst.msk [vmem:[#allocation3 + $0x64] sm:$0xf] %vm278_vm0, %v2176_v1  ;;  %930 = vst.msk [vmem:[#allocation3 + $0x6c] sm:$0xf] %vm278_vm0, %v2176_v1  ;;  %v2638_v29 = vld [vmem:[%s3254_s1 + $0x70] sm:$0xf] }
  0x30   : > { %931 = vst.msk [vmem:[#allocation3 + $0x70] sm:$0xf] %vm278_vm0, %v2176_v1  ;;  %933 = vst.msk [vmem:[#allocation3 + $0x78] sm:$0xf] %vm278_vm0, %v2176_v1  ;;  %v2643_v30 = vld [vmem:[%s3254_s1 + $0x74] sm:$0xf] }
  0x31   : > { %934 = vst.msk [vmem:[#allocation3 + $0x7c] sm:$0xf] %vm278_vm0, %v2176_v1  ;;  %936 = vst.msk [vmem:[#allocation3 + $0x84] sm:$0xf] %vm278_vm0, %v2176_v1  ;;  %v2648_v31 = vld [vmem:[%s3254_s1 + $0x78] sm:$0xf] }
  0x32   : > { %937 = vst.msk [vmem:[#allocation3 + $0x88] sm:$0xf] %vm278_vm0, %v2176_v1  ;;  %939 = vst.msk [vmem:[#allocation3 + $0x90] sm:$0xf] %vm278_vm0, %v2176_v1  ;;  %v2653_v32 = vld [vmem:[%s3254_s1 + $0x7c] sm:$0xf] }
  0x33   : > { %940 = vst.msk [vmem:[#allocation3 + $0x94] sm:$0xf] %vm278_vm0, %v2176_v1  ;;  %942 = vst.msk [vmem:[#allocation3 + $0x9c] sm:$0xf] %vm278_vm0, %v2176_v1  ;;  %v2658_v33 = vld [vmem:[%s3254_s1 + $0x80] sm:$0xf] }
  0x34   : > { %943 = vst.msk [vmem:[#allocation3 + $0xa0] sm:$0xf] %vm278_vm0, %v2176_v1  ;;  %945 = vst.msk [vmem:[#allocation3 + $0xa8] sm:$0xf] %vm278_vm0, %v2176_v1  ;;  %v2663_v34 = vld [vmem:[%s3254_s1 + $0x84] sm:$0xf] }
  0x35   : > { %946 = vst.msk [vmem:[#allocation3 + $0xac] sm:$0xf] %vm278_vm0, %v2176_v1  ;;  %948 = vst.msk [vmem:[#allocation3 + $0xb4] sm:$0xf] %vm278_vm0, %v2176_v1  ;;  %v2668_v35 = vld [vmem:[%s3254_s1 + $0x88] sm:$0xf] }
  0x36   : > { %949 = vst.msk [vmem:[#allocation3 + $0xb8] sm:$0xf] %vm278_vm0, %v2176_v1  ;;  %951 = vst.msk [vmem:[#allocation3 + $0xc0] sm:$0xf] %vm278_vm0, %v2176_v1  ;;  %v2673_v36 = vld [vmem:[%s3254_s1 + $0x8c] sm:$0xf] }
  0x37   : > { %952 = vst.msk [vmem:[#allocation3 + $0xc4] sm:$0xf] %vm278_vm0, %v2176_v1  ;;  %954 = vst.msk [vmem:[#allocation3 + $0xcc] sm:$0xf] %vm278_vm0, %v2176_v1  ;;  %v2678_v37 = vld [vmem:[%s3255_s2] ss:$0 sm:$0xff] }
  0x38   : > { %955 = vst.msk [vmem:[#allocation3 + $0xd0] sm:$0xf] %vm278_vm0, %v2176_v1  ;;  %3266 = vst [vmem:[#allocation8_spill] sm:$0xff] %v2503_v2  ;;  %v2683_v38 = vld [vmem:[%s3256_s3] ss:$0 sm:$0xff]  ;;  %p272_p10 = scmp.lt.s32.totalorder %s2251_s28, 1 }
  0x39   : > { %285 = vst.msk [vmem:[#allocation2 + $0x14] sm:$0x1] %vm281_vm1, %v2176_v1  ;;  %282 = vst.msk [vmem:[#allocation2 + $0x8] sm:$0x1] %vm281_vm1, %v2176_v1  ;;  %vm787_vm2 = vsmask.f32 7938 }
  0x3a   : > { %288 = vst.msk [vmem:[#allocation2 + $0x20] sm:$0x1] %vm281_vm1, %v2176_v1  ;;  %291 = vst.msk [vmem:[#allocation2 + $0x2c] sm:$0x1] %vm281_vm1, %v2176_v1  ;;  %s273_s9 = scalar_select %p272_p10, %s2251_s28, 1 }
  0x3b   : > { %294 = vst.msk [vmem:[#allocation2 + $0x38] sm:$0x1] %vm281_vm1, %v2176_v1  ;;  %297 = vst.msk [vmem:[#allocation2 + $0x44] sm:$0x1] %vm281_vm1, %v2176_v1  ;;  %vm462_vm3 = vsmask.f32 256 }
  0x3c   : > { %300 = vst.msk [vmem:[#allocation2 + $0x50] sm:$0x1] %vm281_vm1, %v2176_v1  ;;  %303 = vst.msk [vmem:[#allocation2 + $0x5c] sm:$0x1] %vm281_vm1, %v2176_v1  ;;  %s1916_s13 = sshll.u32 %s273_s9, 8  ;;  %s271_s18 = scalar_lea.vmem [#allocation4], %s2687_s8 }
  0x3d   : > { %306 = vst.msk [vmem:[#allocation2 + $0x68] sm:$0x1] %vm281_vm1, %v2176_v1  ;;  %309 = vst.msk [vmem:[#allocation2 + $0x74] sm:$0x1] %vm281_vm1, %v2176_v1  ;;  %s2694_s17 = scalar_lea.vmem %s3253_s0, %s1916_s13  ;;  %vm463_vm4 = vsmask.f32 4368 }
  0x3e   : > { %312 = vst.msk [vmem:[#allocation2 + $0x80] sm:$0x1] %vm281_vm1, %v2176_v1  ;;  %315 = vst.msk [vmem:[#allocation2 + $0x8c] sm:$0x1] %vm281_vm1, %v2176_v1  ;;  %v334_v39 = vld [vmem:[%s2694_s17] sm:$0xff]  ;;  %v335_v40 = vld [vmem:[%s2694_s17 + $0x8] sm:$0xff] }
  0x3f   : > { %318 = vst.msk [vmem:[#allocation2 + $0x98] sm:$0x1] %vm281_vm1, %v2176_v1  ;;  %321 = vst.msk [vmem:[#allocation2 + $0xa4] sm:$0x1] %vm281_vm1, %v2176_v1  ;;  %v336_v41 = vld [vmem:[%s2694_s17 + $0x10] sm:$0xff]  ;;  %v1917_v42 = vpack.c.bf16 %v334_v39, %v334_v39  ;;  %v1918_v43 = vpack.c.bf16 %v335_v40, %v335_v40  ;;  %v337_v45 = vld [vmem:[%s2694_s17 + $0x18] sm:$0xff] }
  0x40   : > { %324 = vst.msk [vmem:[#allocation2 + $0xb0] sm:$0x1] %vm281_vm1, %v2176_v1  ;;  %327 = vst.msk [vmem:[#allocation2 + $0xbc] sm:$0x1] %vm281_vm1, %v2176_v1  ;;  %v1919_v44 = vpack.c.bf16 %v336_v41, %v336_v41  ;;  %v338_v46 = vld [vmem:[%s2694_s17 + $0x20] sm:$0xff]  ;;  %v339_v47 = vld [vmem:[%s2694_s17 + $0x28] sm:$0xff]  ;;  %v1920_v48 = vpack.c.bf16 %v337_v45, %v337_v45 }
  0x41   : > { %330 = vst.msk [vmem:[#allocation2 + $0xc8] sm:$0x1] %vm281_vm1, %v2176_v1  ;;  %333 = vst.msk [vmem:[#allocation2 + $0xd4] sm:$0x1] %vm281_vm1, %v2176_v1  ;;  %v1921_v49 = vpack.c.bf16 %v338_v46, %v338_v46  ;;  %v1922_v50 = vpack.c.bf16 %v339_v47, %v339_v47  ;;  %v466_v51 = vshrl.u32 %v1917_v42, 16  ;;  %v469_v52 = vshll.u32 %v1917_v42, 16 }
  0x42   : > { %905 = vst.msk [vmem:[#allocation3 + $0x8] sm:$0x1] %vm281_vm1, %v2176_v1  ;;  %908 = vst.msk [vmem:[#allocation3 + $0x14] sm:$0x1] %vm281_vm1, %v2176_v1  ;;  %v474_v53 = vshrl.u32 %v1918_v43, 16  ;;  %v477_v54 = vshll.u32 %v1918_v43, 16 }
  0x43   : > { %911 = vst.msk [vmem:[#allocation3 + $0x20] sm:$0x1] %vm281_vm1, %v2176_v1  ;;  %914 = vst.msk [vmem:[#allocation3 + $0x2c] sm:$0x1] %vm281_vm1, %v2176_v1  ;;  %v483_v56 = vshrl.u32 %v1919_v44, 16  ;;  %v486_v57 = vshll.u32 %v1919_v44, 16 }
  0x44   : > { %917 = vst.msk [vmem:[#allocation3 + $0x38] sm:$0x1] %vm281_vm1, %v2176_v1  ;;  %920 = vst.msk [vmem:[#allocation3 + $0x44] sm:$0x1] %vm281_vm1, %v2176_v1  ;;  %v491_v58 = vshrl.u32 %v1920_v48, 16  ;;  %v494_v59 = vshll.u32 %v1920_v48, 16 }
  0x45   : > { %923 = vst.msk [vmem:[#allocation3 + $0x50] sm:$0x1] %vm281_vm1, %v2176_v1  ;;  %926 = vst.msk [vmem:[#allocation3 + $0x5c] sm:$0x1] %vm281_vm1, %v2176_v1  ;;  %v468_v60 = vrot.slane %v466_v51, 7  ;;  %v476_v62 = vrot.slane %v474_v53, 7 }
  0x46   : > { %929 = vst.msk [vmem:[#allocation3 + $0x68] sm:$0x1] %vm281_vm1, %v2176_v1  ;;  %932 = vst.msk [vmem:[#allocation3 + $0x74] sm:$0x1] %vm281_vm1, %v2176_v1  ;;  %v789_v61 = vld [vmem:[#allocation2 + $0xc] sm:$0xf] }
  0x47   : > { %935 = vst.msk [vmem:[#allocation3 + $0x80] sm:$0x1] %vm281_vm1, %v2176_v1  ;;  %938 = vst.msk [vmem:[#allocation3 + $0x8c] sm:$0x1] %vm281_vm1, %v2176_v1  ;;  %v503_v39 = vshll.u32 %v1921_v49, 16  ;;  %v485_v42 = vrot.slane %v483_v56, 7  ;;  %v471_v46 = vor.u32 %v469_v52, %v468_v60  ;;  %v479_v48 = vor.u32 %v477_v54, %v476_v62 }
  0x48   : > { %941 = vst.msk [vmem:[#allocation3 + $0x98] sm:$0x1] %vm281_vm1, %v2176_v1  ;;  %944 = vst.msk [vmem:[#allocation3 + $0xa4] sm:$0x1] %vm281_vm1, %v2176_v1  ;;  %v795_v41 = vld [vmem:[#allocation2 + $0x14] sm:$0x1] }
  0x49   : > { %947 = vst.msk [vmem:[#allocation3 + $0xb0] sm:$0x1] %vm281_vm1, %v2176_v1  ;;  %950 = vst.msk [vmem:[#allocation3 + $0xbc] sm:$0x1] %vm281_vm1, %v2176_v1  ;;  %v493_v43 = vrot.slane %v491_v58, 7  ;;  %v508_v44 = vshrl.u32 %v1922_v50, 16 }
  0x4a   : > { %953 = vst.msk [vmem:[#allocation3 + $0xc8] sm:$0x1] %vm281_vm1, %v2176_v1  ;;  %956 = vst.msk [vmem:[#allocation3 + $0xd4] sm:$0x1] %vm281_vm1, %v2176_v1  ;;  %v500_v1 = vshrl.u32 %v1921_v49, 16  ;;  %v511_v45 = vshll.u32 %v1922_v50, 16 }
  0x4b   : > { %3267 = vst [vmem:[#allocation9_spill] sm:$0xff] %v2508_v3  ;;  %3268 = vst [vmem:[#allocation10_spill] sm:$0xff] %v2578_v17  ;;  %v472_v47 = vrot.slane %v468_v60, 4  ;;  %v481_v51 = vrot.slane %v476_v62, 4  ;;  %v798_v49 = vld [vmem:[#allocation2 + $0x18] sm:$0xf]  ;;  %v496_v0 = vor.u32 %v494_v59, %v493_v43 }
  0x4c   : > { %3269 = vst [vmem:[#allocation11_spill] sm:$0xff] %v2583_v18  ;;  %3270 = vst [vmem:[#allocation12_spill] sm:$0xff] %v2678_v37  ;;  %v802_v53 = vld [vmem:[#allocation2 + $0x20] sm:$0x1]  ;;  %v489_v37 = vrot.slane %v485_v42, 4  ;;  %v498_v2 = vrot.slane %v493_v43, 4 }
  0x4d   : > { %3271 = vst [vmem:[#allocation13_spill] sm:$0xff] %v2683_v38  ;;  %vm2704_vm5 = vmand %vm278_vm0, %vm787_vm2  ;;  %v488_v38 = vor.u32 %v486_v57, %v485_v42  ;;  %v340_v17 = vld [vmem:[%s2694_s17 + $0x30] sm:$0xff]  ;;  %v341_v18 = vld [vmem:[%s2694_s17 + $0x38] sm:$0xff]  ;;  %v502_v58 = vrot.slane %v500_v1, 7  ;;  %v510_v42 = vrot.slane %v508_v44, 7  ;;  %s2859_s19 = smov 0  }
  0x4e   : > { %vm2710_vm6 = vmand %vm281_vm1, %vm462_vm3  ;;  %v790_v56 = vsel %vm2704_vm5, %v471_v46, %v789_v61  ;;  %v342_v54 = vld [vmem:[%s2694_s17 + $0x40] sm:$0xff]  ;;  %v343_v60 = vld [vmem:[%s2694_s17 + $0x48] sm:$0xff]  ;;  %v1923_v46 = vpack.c.bf16 %v340_v17, %v340_v17 }
  0x4f   : > { %vm2716_vm7 = vmor %vm462_vm3, %vm463_vm4  ;;  %v796_v52 = vsel %vm2710_vm6, %v481_v51, %v795_v41  ;;  %791 = vst [vmem:[#allocation2 + $0xc] sm:$0xf] %v790_v56  ;;  %v799_v57 = vsel %vm2704_vm5, %v488_v38, %v798_v49  ;;  %v803_v61 = vsel %vm2710_vm6, %v498_v2, %v802_v53  ;;  %v805_v62 = vld [vmem:[#allocation2 + $0x24] sm:$0xf]  ;;  %v505_v1 = vor.u32 %v503_v39, %v502_v58  ;;  %v809_v43 = vld [vmem:[#allocation2 + $0x2c] sm:$0x1] }
  0x50   : > { %v480_v50 = vsel %vm2716_vm7, %v472_v47, %v479_v48  ;;  %797 = vst [vmem:[#allocation2 + $0x14] sm:$0x1] %v796_v52  ;;  %v497_v59 = vsel %vm2716_vm7, %v489_v37, %v496_v0  ;;  %800 = vst [vmem:[#allocation2 + $0x18] sm:$0xf] %v799_v57  ;;  %v506_v41 = vrot.slane %v502_v58, 4  ;;  %v1924_v47 = vpack.c.bf16 %v341_v18, %v341_v18  ;;  %v344_v53 = vld [vmem:[%s2694_s17 + $0x50] sm:$0xff] }
  0x51   : > { %792 = vst.msk [vmem:[#allocation2 + $0x10] sm:$0xf] %vm278_vm0, %v480_v50  ;;  %801 = vst.msk [vmem:[#allocation2 + $0x1c] sm:$0xf] %vm278_vm0, %v497_v59  ;;  %v513_v38 = vor.u32 %v511_v45, %v510_v42  ;;  %v515_v48 = vrot.slane %v510_v42, 4  ;;  %v1925_v51 = vpack.c.bf16 %v342_v54, %v342_v54  ;;  %v1926_v0 = vpack.c.bf16 %v343_v60, %v343_v60  ;;  %v345_v56 = vld [vmem:[%s2694_s17 + $0x58] sm:$0xff] }
  0x52   : > { %804 = vst [vmem:[#allocation2 + $0x20] sm:$0x1] %v803_v61  ;;  %v806_v2 = vsel %vm2704_vm5, %v505_v1, %v805_v62  ;;  %v517_v37 = vshrl.u32 %v1923_v46, 16  ;;  %v520_v44 = vshll.u32 %v1923_v46, 16  ;;  %v525_v49 = vshrl.u32 %v1924_v47, 16 }
  0x53   : > { %807 = vst [vmem:[#allocation2 + $0x24] sm:$0xf] %v806_v2  ;;  %v514_v39 = vsel %vm2716_vm7, %v506_v41, %v513_v38  ;;  %v810_v17 = vsel %vm2710_vm6, %v515_v48, %v809_v43  ;;  %v528_v18 = vshll.u32 %v1924_v47, 16  ;;  %v534_v45 = vshrl.u32 %v1925_v51, 16  ;;  %v812_v60 = vld [vmem:[#allocation2 + $0x30] sm:$0xf] }
  0x54   : > { %808 = vst.msk [vmem:[#allocation2 + $0x28] sm:$0xf] %vm278_vm0, %v514_v39  ;;  %811 = vst [vmem:[#allocation2 + $0x2c] sm:$0x1] %v810_v17  ;;  %v519_v50 = vrot.slane %v517_v37, 7  ;;  %v527_v52 = vrot.slane %v525_v49, 7  ;;  %v1927_v62 = vpack.c.bf16 %v344_v53, %v344_v53  ;;  %v1928_v42 = vpack.c.bf16 %v345_v56, %v345_v56 }
  0x55   : > { %v537_v58 = vshll.u32 %v1925_v51, 16  ;;  %v542_v54 = vshrl.u32 %v1926_v0, 16  ;;  %v816_v57 = vld [vmem:[#allocation2 + $0x38] sm:$0x1]  ;;  %v536_v59 = vrot.slane %v534_v45, 7  ;;  %v545_v61 = vshll.u32 %v1926_v0, 16 }
  0x56   : > { %v522_v1 = vor.u32 %v520_v44, %v519_v50  ;;  %v523_v41 = vrot.slane %v519_v50, 4  ;;  %v530_v43 = vor.u32 %v528_v18, %v527_v52  ;;  %v532_v46 = vrot.slane %v527_v52, 4  ;;  %v819_v47 = vld [vmem:[#allocation2 + $0x3c] sm:$0xf]  ;;  %v346_v49 = vld [vmem:[%s2694_s17 + $0x60] sm:$0xff]  ;;  %v347_v51 = vld [vmem:[%s2694_s17 + $0x68] sm:$0xff] }
  0x57   : > { %v539_v38 = vor.u32 %v537_v58, %v536_v59  ;;  %v540_v48 = vrot.slane %v536_v59, 4  ;;  %v544_v2 = vrot.slane %v542_v54, 7  ;;  %v551_v37 = vshrl.u32 %v1927_v62, 16  ;;  %v823_v44 = vld [vmem:[#allocation2 + $0x44] sm:$0x1]  ;;  %v348_v59 = vld [vmem:[%s2694_s17 + $0x70] sm:$0xff] }
  0x58   : > { %v813_v39 = vsel %vm2704_vm5, %v522_v1, %v812_v60  ;;  %v531_v17 = vsel %vm2716_vm7, %v523_v41, %v530_v43  ;;  %v817_v0 = vsel %vm2710_vm6, %v532_v46, %v816_v57  ;;  %v554_v53 = vshll.u32 %v1927_v62, 16  ;;  %v826_v52 = vld [vmem:[#allocation2 + $0x48] sm:$0xf]  ;;  %v349_v1 = vld [vmem:[%s2694_s17 + $0x78] sm:$0xff] }
  0x59   : > { %814 = vst [vmem:[#allocation2 + $0x30] sm:$0xf] %v813_v39  ;;  %815 = vst.msk [vmem:[#allocation2 + $0x34] sm:$0xf] %vm278_vm0, %v531_v17  ;;  %v820_v56 = vsel %vm2704_vm5, %v539_v38, %v819_v47  ;;  %v547_v18 = vor.u32 %v545_v61, %v544_v2  ;;  %v549_v45 = vrot.slane %v544_v2, 4  ;;  %v553_v50 = vrot.slane %v551_v37, 7 }
  0x5a   : > { %818 = vst [vmem:[#allocation2 + $0x38] sm:$0x1] %v817_v0  ;;  %821 = vst [vmem:[#allocation2 + $0x3c] sm:$0xf] %v820_v56  ;;  %v559_v58 = vshrl.u32 %v1928_v42, 16  ;;  %v562_v54 = vshll.u32 %v1928_v42, 16  ;;  %v1929_v60 = vpack.c.bf16 %v346_v49, %v346_v49  ;;  %v1930_v57 = vpack.c.bf16 %v347_v51, %v347_v51 }
  0x5b   : > { %v548_v62 = vsel %vm2716_vm7, %v540_v48, %v547_v18  ;;  %v824_v41 = vsel %vm2710_vm6, %v549_v45, %v823_v44  ;;  %v556_v43 = vor.u32 %v554_v53, %v553_v50  ;;  %v557_v46 = vrot.slane %v553_v50, 4  ;;  %v830_v37 = vld [vmem:[#allocation2 + $0x50] sm:$0x1]  ;;  %v833_v44 = vld [vmem:[#allocation2 + $0x54] sm:$0xf]  ;;  %v350_v56 = vld [vmem:[%s2694_s17 + $0x80] sm:$0xff] }
  0x5c   : > { %822 = vst.msk [vmem:[#allocation2 + $0x40] sm:$0xf] %vm278_vm0, %v548_v62  ;;  %825 = vst [vmem:[#allocation2 + $0x44] sm:$0x1] %v824_v41  ;;  %v561_v61 = vrot.slane %v559_v58, 7  ;;  %v568_v47 = vshrl.u32 %v1929_v60, 16  ;;  %v1931_v49 = vpack.c.bf16 %v348_v59, %v348_v59  ;;  %v1932_v51 = vpack.c.bf16 %v349_v1, %v349_v1 }
  0x5d   : > { %v571_v38 = vshll.u32 %v1929_v60, 16  ;;  %v576_v42 = vshrl.u32 %v1930_v57, 16  ;;  %v827_v2 = vsel %vm2704_vm5, %v556_v43, %v826_v52  ;;  %v579_v48 = vshll.u32 %v1930_v57, 16  ;;  %v351_v60 = vld [vmem:[%s2694_s17 + $0x88] sm:$0xff]  ;;  %v352_v62 = vld [vmem:[%s2694_s17 + $0x90] sm:$0xff] }
  0x5e   : > { %828 = vst [vmem:[#allocation2 + $0x48] sm:$0xf] %v827_v2  ;;  %v564_v39 = vor.u32 %v562_v54, %v561_v61  ;;  %v566_v17 = vrot.slane %v561_v61, 4  ;;  %v570_v0 = vrot.slane %v568_v47, 7  ;;  %v585_v18 = vshrl.u32 %v1931_v49, 16 }
  0x5f   : > { %v578_v53 = vrot.slane %v576_v42, 7  ;;  %v588_v45 = vshll.u32 %v1931_v49, 16  ;;  %v593_v50 = vshrl.u32 %v1932_v51, 16  ;;  %v596_v58 = vshll.u32 %v1932_v51, 16  ;;  %v837_v54 = vld [vmem:[#allocation2 + $0x5c] sm:$0x1] }
  0x60   : > { %v565_v52 = vsel %vm2716_vm7, %v557_v46, %v564_v39  ;;  %v831_v57 = vsel %vm2710_vm6, %v566_v17, %v830_v37  ;;  %v573_v59 = vor.u32 %v571_v38, %v570_v0  ;;  %v574_v1 = vrot.slane %v570_v0, 4  ;;  %v840_v2 = vld [vmem:[#allocation2 + $0x60] sm:$0xf]  ;;  %v844_v17 = vld [vmem:[#allocation2 + $0x68] sm:$0x1] }
  0x61   : > { %829 = vst.msk [vmem:[#allocation2 + $0x4c] sm:$0xf] %vm278_vm0, %v565_v52  ;;  %832 = vst [vmem:[#allocation2 + $0x50] sm:$0x1] %v831_v57  ;;  %v581_v41 = vor.u32 %v579_v48, %v578_v53  ;;  %v583_v43 = vrot.slane %v578_v53, 4  ;;  %v587_v61 = vrot.slane %v585_v18, 7  ;;  %v1933_v49 = vpack.c.bf16 %v350_v56, %v350_v56 }
  0x62   : > { %v595_v47 = vrot.slane %v593_v50, 7  ;;  %v834_v42 = vsel %vm2704_vm5, %v573_v59, %v833_v44  ;;  %v1934_v46 = vpack.c.bf16 %v351_v60, %v351_v60  ;;  %v1935_v51 = vpack.c.bf16 %v352_v62, %v352_v62  ;;  %v353_v18 = vld [vmem:[%s2694_s17 + $0x98] sm:$0xff]  ;;  %v354_v50 = vld [vmem:[%s2694_s17 + $0xa0] sm:$0xff]  ;;  %v355_v59 = vld [vmem:[%s2694_s17 + $0xa8] sm:$0xff] }
  0x63   : > { %835 = vst [vmem:[#allocation2 + $0x54] sm:$0xf] %v834_v42  ;;  %v582_v38 = vsel %vm2716_vm7, %v574_v1, %v581_v41  ;;  %v838_v37 = vsel %vm2710_vm6, %v583_v43, %v837_v54  ;;  %v590_v48 = vor.u32 %v588_v45, %v587_v61  ;;  %v591_v39 = vrot.slane %v587_v61, 4  ;;  %v356_v45 = vld [vmem:[%s2694_s17 + $0xb0] sm:$0xff]  ;;  %v847_v43 = vld [vmem:[#allocation2 + $0x6c] sm:$0xf] }
  0x64   : > { %836 = vst.msk [vmem:[#allocation2 + $0x58] sm:$0xf] %vm278_vm0, %v582_v38  ;;  %839 = vst [vmem:[#allocation2 + $0x5c] sm:$0x1] %v838_v37  ;;  %v598_v0 = vor.u32 %v596_v58, %v595_v47  ;;  %v600_v44 = vrot.slane %v595_v47, 4  ;;  %v602_v53 = vshrl.u32 %v1933_v49, 16  ;;  %v1936_v42 = vpack.c.bf16 %v353_v18, %v353_v18 }
  0x65   : > { %v605_v56 = vshll.u32 %v1933_v49, 16  ;;  %v841_v60 = vsel %vm2704_vm5, %v590_v48, %v840_v2  ;;  %v610_v62 = vshrl.u32 %v1934_v46, 16  ;;  %v613_v52 = vshll.u32 %v1934_v46, 16  ;;  %v851_v38 = vld [vmem:[#allocation2 + $0x74] sm:$0x1]  ;;  %v357_v18 = vld [vmem:[%s2694_s17 + $0xb8] sm:$0xff] }
  0x66   : > { %v619_v57 = vshrl.u32 %v1935_v51, 16  ;;  %842 = vst [vmem:[#allocation2 + $0x60] sm:$0xf] %v841_v60  ;;  %v599_v1 = vsel %vm2716_vm7, %v591_v39, %v598_v0  ;;  %v845_v58 = vsel %vm2710_vm6, %v600_v44, %v844_v17  ;;  %v604_v54 = vrot.slane %v602_v53, 7  ;;  %v854_v37 = vld [vmem:[#allocation2 + $0x78] sm:$0xf] }
  0x67   : > { %v622_v41 = vshll.u32 %v1935_v51, 16  ;;  %843 = vst.msk [vmem:[#allocation2 + $0x64] sm:$0xf] %vm278_vm0, %v599_v1  ;;  %846 = vst [vmem:[#allocation2 + $0x68] sm:$0x1] %v845_v58  ;;  %v612_v61 = vrot.slane %v610_v62, 7  ;;  %v1937_v2 = vpack.c.bf16 %v354_v50, %v354_v50  ;;  %v1938_v48 = vpack.c.bf16 %v355_v59, %v355_v59 }
  0x68   : > { %v621_v47 = vrot.slane %v619_v57, 7  ;;  %v607_v49 = vor.u32 %v605_v56, %v604_v54  ;;  %v608_v46 = vrot.slane %v604_v54, 4  ;;  %v1939_v39 = vpack.c.bf16 %v356_v45, %v356_v45  ;;  %v358_v1 = vld [vmem:[%s2694_s17 + $0xc0] sm:$0xff] }
  0x69   : > { %v615_v0 = vor.u32 %v613_v52, %v612_v61  ;;  %v617_v17 = vrot.slane %v612_v61, 4  ;;  %v627_v60 = vshrl.u32 %v1936_v42, 16  ;;  %v630_v62 = vshll.u32 %v1936_v42, 16  ;;  %v861_v61 = vld [vmem:[#allocation2 + $0x84] sm:$0xf] }
  0x6a   : > { %v624_v44 = vor.u32 %v622_v41, %v621_v47  ;;  %v625_v51 = vrot.slane %v621_v47, 4  ;;  %v848_v53 = vsel %vm2704_vm5, %v607_v49, %v847_v43  ;;  %v636_v57 = vshrl.u32 %v1937_v2, 16  ;;  %v858_v43 = vld [vmem:[#allocation2 + $0x80] sm:$0x1] }
  0x6b   : > { %849 = vst [vmem:[#allocation2 + $0x6c] sm:$0xf] %v848_v53  ;;  %v616_v56 = vsel %vm2716_vm7, %v608_v46, %v615_v0  ;;  %v852_v50 = vsel %vm2710_vm6, %v617_v17, %v851_v38  ;;  %v639_v59 = vshll.u32 %v1937_v2, 16  ;;  %v629_v45 = vrot.slane %v627_v60, 7  ;;  %v359_v60 = vld [vmem:[%s2694_s17 + $0xc8] sm:$0xff] }
  0x6c   : > { %v855_v52 = vsel %vm2704_vm5, %v624_v44, %v854_v37  ;;  %850 = vst.msk [vmem:[#allocation2 + $0x70] sm:$0xf] %vm278_vm0, %v616_v56  ;;  %853 = vst [vmem:[#allocation2 + $0x74] sm:$0x1] %v852_v50  ;;  %v638_v58 = vrot.slane %v636_v57, 7  ;;  %v644_v54 = vshrl.u32 %v1938_v48, 16  ;;  %v1940_v49 = vpack.c.bf16 %v357_v18, %v357_v18 }
  0x6d   : > { %856 = vst [vmem:[#allocation2 + $0x78] sm:$0xf] %v855_v52  ;;  %v647_v41 = vshll.u32 %v1938_v48, 16  ;;  %v653_v47 = vshrl.u32 %v1939_v39, 16  ;;  %v656_v42 = vshll.u32 %v1939_v39, 16  ;;  %v1941_v46 = vpack.c.bf16 %v358_v1, %v358_v1  ;;  %v360_v50 = vld [vmem:[%s2694_s17 + $0xd0] sm:$0xff] }
  0x6e   : > { %v632_v38 = vor.u32 %v630_v62, %v629_v45  ;;  %v634_v0 = vrot.slane %v629_v45, 4  ;;  %v641_v37 = vor.u32 %v639_v59, %v638_v58  ;;  %v642_v2 = vrot.slane %v638_v58, 4  ;;  %v865_v18 = vld [vmem:[#allocation2 + $0x8c] sm:$0x1]  ;;  %v868_v1 = vld [vmem:[#allocation2 + $0x90] sm:$0xf] }
  0x6f   : > { %v646_v17 = vrot.slane %v644_v54, 7  ;;  %v655_v44 = vrot.slane %v653_v47, 7  ;;  %v661_v53 = vshrl.u32 %v1940_v49, 16  ;;  %v664_v56 = vshll.u32 %v1940_v49, 16 }
  0x70   : > { %v633_v57 = vsel %vm2716_vm7, %v625_v51, %v632_v38  ;;  %v859_v48 = vsel %vm2710_vm6, %v634_v0, %v858_v43  ;;  %v862_v39 = vsel %vm2704_vm5, %v641_v37, %v861_v61  ;;  %v670_v62 = vshrl.u32 %v1941_v46, 16  ;;  %v872_v0 = vld [vmem:[#allocation2 + $0x98] sm:$0x1] }
  0x71   : > { %857 = vst.msk [vmem:[#allocation2 + $0x7c] sm:$0xf] %vm278_vm0, %v633_v57  ;;  %860 = vst [vmem:[#allocation2 + $0x80] sm:$0x1] %v859_v48  ;;  %v649_v52 = vor.u32 %v647_v41, %v646_v17  ;;  %v651_v59 = vrot.slane %v646_v17, 4  ;;  %v658_v45 = vor.u32 %v656_v42, %v655_v44  ;;  %v659_v58 = vrot.slane %v655_v44, 4 }
  0x72   : > { %863 = vst [vmem:[#allocation2 + $0x84] sm:$0xf] %v862_v39  ;;  %v663_v51 = vrot.slane %v661_v53, 7  ;;  %v672_v54 = vrot.slane %v670_v62, 7  ;;  %v673_v47 = vshll.u32 %v1941_v46, 16  ;;  %v1942_v43 = vpack.c.bf16 %v359_v60, %v359_v60  ;;  %v361_v37 = vld [vmem:[%s2694_s17 + $0xd8] sm:$0xff] }
  0x73   : > { %v650_v61 = vsel %vm2716_vm7, %v642_v2, %v649_v52  ;;  %v866_v49 = vsel %vm2710_vm6, %v651_v59, %v865_v18  ;;  %v869_v38 = vsel %vm2704_vm5, %v658_v45, %v868_v1  ;;  %v875_v41 = vld [vmem:[#allocation2 + $0x9c] sm:$0xf]  ;;  %v1943_v42 = vpack.c.bf16 %v360_v50, %v360_v50  ;;  %v362_v53 = vld [vmem:[%s2694_s17 + $0xe0] sm:$0xff]  ;;  %v363_v60 = vld [vmem:[%s2694_s17 + $0xe8] sm:$0xff] }
  0x74   : > { %864 = vst.msk [vmem:[#allocation2 + $0x88] sm:$0xf] %vm278_vm0, %v650_v61  ;;  %867 = vst [vmem:[#allocation2 + $0x8c] sm:$0x1] %v866_v49  ;;  %v666_v46 = vor.u32 %v664_v56, %v663_v51  ;;  %v668_v17 = vrot.slane %v663_v51, 4  ;;  %v675_v44 = vor.u32 %v673_v47, %v672_v54  ;;  %v676_v2 = vrot.slane %v672_v54, 4 }
  0x75   : > { %870 = vst [vmem:[#allocation2 + $0x90] sm:$0xf] %v869_v38  ;;  %v678_v57 = vshrl.u32 %v1942_v43, 16  ;;  %v681_v48 = vshll.u32 %v1942_v43, 16  ;;  %v687_v39 = vshrl.u32 %v1943_v42, 16  ;;  %v690_v18 = vshll.u32 %v1943_v42, 16 }
  0x76   : > { %v364_v1 = vld [vmem:[%s2694_s17 + $0xf0] sm:$0xff]  ;;  %v365_v62 = vld [vmem:[%s2694_s17 + $0xf8] sm:$0xff]  ;;  %v667_v50 = vsel %vm2716_vm7, %v659_v58, %v666_v46  ;;  %v873_v52 = vsel %vm2710_vm6, %v668_v17, %v872_v0  ;;  %v876_v56 = vsel %vm2704_vm5, %v675_v44, %v875_v41  ;;  %v1944_v59 = vpack.c.bf16 %v361_v37, %v361_v37  ;;  %v879_v43 = vld [vmem:[#allocation2 + $0xa4] sm:$0x1] }
  0x77   : > { %871 = vst.msk [vmem:[#allocation2 + $0x94] sm:$0xf] %vm278_vm0, %v667_v50  ;;  %874 = vst [vmem:[#allocation2 + $0x98] sm:$0x1] %v873_v52  ;;  %v680_v45 = vrot.slane %v678_v57, 7  ;;  %v689_v51 = vrot.slane %v687_v39, 7  ;;  %v1945_v54 = vpack.c.bf16 %v362_v53, %v362_v53  ;;  %v1946_v47 = vpack.c.bf16 %v363_v60, %v363_v60 }
  0x78   : > { %877 = vst [vmem:[#allocation2 + $0x9c] sm:$0xf] %v876_v56  ;;  %v882_v61 = vld [vmem:[#allocation2 + $0xa8] sm:$0xf]  ;;  %v695_v49 = vshrl.u32 %v1944_v59, 16  ;;  %v698_v38 = vshll.u32 %v1944_v59, 16  ;;  %v1947_v58 = vpack.c.bf16 %v364_v1, %v364_v1  ;;  %v1948_v42 = vpack.c.bf16 %v365_v62, %v365_v62 }
  0x79   : > { %v683_v46 = vor.u32 %v681_v48, %v680_v45  ;;  %v685_v0 = vrot.slane %v680_v45, 4  ;;  %v692_v17 = vor.u32 %v690_v18, %v689_v51  ;;  %v693_v3 = vrot.slane %v689_v51, 4  ;;  %v886_v39 = vld [vmem:[#allocation2 + $0xb0] sm:$0x1]  ;;  %v889_v56 = vld [vmem:[#allocation2 + $0xb4] sm:$0xf] }
  0x7a   : > { %v697_v41 = vrot.slane %v695_v49, 7  ;;  %v704_v37 = vshrl.u32 %v1945_v54, 16  ;;  %v707_v44 = vshll.u32 %v1945_v54, 16  ;;  %v712_v50 = vshrl.u32 %v1946_v47, 16  ;;  %v893_v49 = vld [vmem:[#allocation2 + $0xbc] sm:$0x1] }
  0x7b   : > { %v684_v57 = vsel %vm2716_vm7, %v676_v2, %v683_v46  ;;  %v880_v53 = vsel %vm2710_vm6, %v685_v0, %v879_v43  ;;  %v883_v60 = vsel %vm2704_vm5, %v692_v17, %v882_v61  ;;  %v715_v1 = vshll.u32 %v1946_v47, 16 }
  0x7c   : > { %878 = vst.msk [vmem:[#allocation2 + $0xa0] sm:$0xf] %vm278_vm0, %v684_v57  ;;  %881 = vst [vmem:[#allocation2 + $0xa4] sm:$0x1] %v880_v53  ;;  %v700_v48 = vor.u32 %v698_v38, %v697_v41  ;;  %v702_v18 = vrot.slane %v697_v41, 4  ;;  %v706_v62 = vrot.slane %v704_v37, 7 }
  0x7d   : > { %884 = vst [vmem:[#allocation2 + $0xa8] sm:$0xf] %v883_v60  ;;  %v714_v52 = vrot.slane %v712_v50, 7  ;;  %v721_v59 = vshrl.u32 %v1947_v58, 16  ;;  %v724_v45 = vshll.u32 %v1947_v58, 16  ;;  %v729_v2 = vshrl.u32 %v1948_v42, 16 }
  0x7e   : > { %v732_v51 = vshll.u32 %v1948_v42, 16  ;;  %v701_v54 = vsel %vm2716_vm7, %v693_v3, %v700_v48  ;;  %v887_v43 = vsel %vm2710_vm6, %v702_v18, %v886_v39  ;;  %v709_v47 = vor.u32 %v707_v44, %v706_v62  ;;  %v896_v42 = vld [vmem:[#allocation2 + $0xc0] sm:$0xf]  ;;  %v900_v50 = vld [vmem:[#allocation2 + $0xc8] sm:$0x1] }
  0x7f   : > { %v710_v61 = vrot.slane %v706_v62, 4  ;;  %885 = vst.msk [vmem:[#allocation2 + $0xac] sm:$0xf] %vm278_vm0, %v701_v54  ;;  %888 = vst [vmem:[#allocation2 + $0xb0] sm:$0x1] %v887_v43  ;;  %v717_v38 = vor.u32 %v715_v1, %v714_v52  ;;  %v719_v46 = vrot.slane %v714_v52, 4 }
  0x80   : > { %v723_v0 = vrot.slane %v721_v59, 7  ;;  %v731_v17 = vrot.slane %v729_v2, 7  ;;  %v890_v58 = vsel %vm2704_vm5, %v709_v47, %v889_v56 }
  0x81   : > { %891 = vst [vmem:[#allocation2 + $0xb4] sm:$0xf] %v890_v58  ;;  %v718_v3 = vsel %vm2716_vm7, %v710_v61, %v717_v38  ;;  %v894_v41 = vsel %vm2710_vm6, %v719_v46, %v893_v49 }
  0x82   : > { %v726_v37 = vor.u32 %v724_v45, %v723_v0  ;;  %v727_v44 = vrot.slane %v723_v0, 4  ;;  %892 = vst.msk [vmem:[#allocation2 + $0xb8] sm:$0xf] %vm278_vm0, %v718_v3  ;;  %895 = vst [vmem:[#allocation2 + $0xbc] sm:$0x1] %v894_v41  ;;  %v734_v57 = vor.u32 %v732_v51, %v731_v17  ;;  %v736_v53 = vrot.slane %v731_v17, 4 }
  0x84   : > { %v897_v60 = vsel %vm2704_vm5, %v726_v37, %v896_v42  ;;  %v735_v39 = vsel %vm2716_vm7, %v727_v44, %v734_v57  ;;  %v901_v1 = vsel %vm2710_vm6, %v736_v53, %v900_v50 }
  0x85   : > { %898 = vst [vmem:[#allocation2 + $0xc0] sm:$0xf] %v897_v60  ;;  %899 = vst.msk [vmem:[#allocation2 + $0xc4] sm:$0xf] %vm278_vm0, %v735_v39 }
  0x86   : > { %902 = vst [vmem:[#allocation2 + $0xc8] sm:$0x1] %v901_v1 }
  0x87 LB: >> { %s1949_s20 = smul.u32 12, %s2170_s19  ;;  %v1864_v40 = vcombine.low %v2648_v31, %v2653_v32  ;;  %v1856_v48 = vcombine.low %v2568_v15, %v2573_v16  ;;  %v1863_v18 = vcombine.low %v2638_v29, %v2643_v30  ;;  %s2177_s22 = smov 32   ;;  %v1855_v56 = vcombine.low %v2558_v13, %v2563_v14  ;;  %v3278_v17 = vld [vmem:[#allocation9_spill] sm:$0xff]  ;;  %v3279_v42 = vld [vmem:[#allocation11_spill] sm:$0xff]  ;;  %v3280_v3 = vld [vmem:[#allocation10_spill] sm:$0xff]  ;;  %s2170_s19 = sphi %s2859_s19, %s1000_s19  }
  0x88   : >> { %v2178_v59 = vmov 0.0   ;;  %v1866_v45 = vcombine.low %v2668_v35, %v2673_v36  ;;  %v1862_v2 = vcombine.low %v2628_v27, %v2633_v28  ;;  %s2179_s23 = smov 64   ;;  %v1865_v51 = vcombine.low %v2658_v33, %v2663_v34  ;;  %v3281_v37 = vld [vmem:[#allocation8_spill] sm:$0xff]  ;;  %v3282_v44 = vld [vmem:[#allocation7_spill] sm:$0xff]  ;;  %s2181_s29 = smov 96  }
  0x89   : >> { %s2867_s21 = scalar_lea.vmem [#allocation2], %s1949_s20  ;;  %1952 = vmatprep.subr.bf16.mxu0 %v1864_v40  ;;  %2002 = vmatprep.subr.bf16.mxu1 %v2178_v59  ;;  %vm2180_vm8 = vmmov 0   ;;  %v1854_v54 = vcombine.low %v2548_v11, %v2553_v12  ;;  %v1861_v43 = vcombine.low %v2618_v25, %v2623_v26  ;;  %v1853_v47 = vcombine.low %v2538_v9, %v2543_v10  ;;  %s1744_s9 = scalar_lea.vmem [#allocation3], %s1949_s20 }
  0x8a   : >> { %1953 = vmatpush3.bf16.msra.mxu0 %v1856_v48  ;;  %2003 = vmatpush3.bf16.msra.mxu1 %v1866_v45  ;;  %v1860_v61 = vcombine.low %v2608_v23, %v2613_v24  ;;  %v1852_v49 = vcombine.low %v2528_v7, %v2533_v8  ;;  %v1859_v38 = vcombine.low %v2598_v21, %v2603_v22  ;;  %vm1053_vm9 = vcmask 261120   ;;  %s1000_s19 = sadd.s32 1, %s2170_s19  }
  0x8b   : >> { %1954 = vmatprep.subr.bf16.mxu0 %v1863_v18  ;;  %2006 = vmatprep.mubr.msk.bf16.mxu1 %vm2180_vm8, %v2178_v59  ;;  %v1851_v46 = vcombine.low %v2518_v5, %v2523_v6  ;;  %v1858_v0 = vcombine.low %v2588_v19, %v2593_v20  ;;  %v1850_v58 = vcombine.low %v3278_v17, %v2513_v4  ;;  %vm1060_vm10 = vcmask 523264   ;;  %p997_p11 = scmp.ge.s32.totalorder %s1000_s19, 16  }
  0x8c   : >> { %2004 = vmatprep.subr.bf16.mxu1 %v2178_v59  ;;  %v1857_v41 = vcombine.low %v3280_v3, %v3279_v42  ;;  %v1849_v50 = vcombine.low %v3282_v44, %v3281_v37  ;;  %vm1080_vm11 = vcmask 1046528   ;;  %vm1065_vm12 = vsmask.f32 7424  ;;  %v2959_v4 = vld [vmem:[%s3257_s4 + $0x10] sm:$0xf] (%p997_p11) }
  0x8d   : >> { %v2086_v55 = vld [vmem:[%s2867_s21 + $0x14] ss:$0 sps:$4 sm:$0x11]   ;;  %v2087_v63 = vld [vmem:[%s2867_s21 + $0xc] sm:$0xff]   ;;  %v2089_v52 = vld [vmem:[%s2867_s21 + $0x18] sm:$0xff]   ;;  %vm1086_vm13 = vcmask 785408  }
  0x8e   : >> { %1039 = vrot.lane.b32.xlu1 %v2086_v55, %s2177_s22  ;;  %1037 = vrot.lane.b32.xlu0 %v2087_v63, %s2177_s22  ;;  %v2088_v62 = vld [vmem:[%s2867_s21 + $0x20] ss:$0 sps:$4 sm:$0x11]   ;;  %v2090_v57 = vld [vmem:[%s2867_s21 + $0x8] ss:$0 sps:$4 sm:$0x11]  }
  0x8f   : >> { %1955 = vmatpush3.bf16.msra.mxu0 %v1855_v56  ;;  %2005 = vmatpush3.bf16.msra.mxu1 %v1865_v51  ;;  %v2091_v39 = vld [vmem:[%s2867_s21] sm:$0xff]   ;;  %vm1313_vm14 = vcmask 1040384   ;;  %v2964_v5 = vld [vmem:[%s3257_s4 + $0x14] sm:$0xf] (%p997_p11)  ;;  %v2969_v6 = vld [vmem:[%s3257_s4 + $0x18] sm:$0xf] (%p997_p11) }
  0x90   : >> { %1956 = vmatprep.subr.bf16.mxu0 %v1862_v2  ;;  %vm1314_vm15 = vmand %vm1313_vm14, %vm462_vm3  ;;  %v2974_v7 = vld [vmem:[%s3257_s4 + $0x1c] sm:$0xf] (%p997_p11)  ;;  %v2979_v8 = vld [vmem:[%s3257_s4 + $0x20] sm:$0xf] (%p997_p11) }
  0x91   : > { %v2984_v9 = vld [vmem:[%s3257_s4 + $0x24] sm:$0xf] (%p997_p11)  ;;  %v2989_v10 = vld [vmem:[%s3257_s4 + $0x28] sm:$0xf] (%p997_p11)  ;;  %v2994_v11 = vld [vmem:[%s3257_s4 + $0x2c] sm:$0xf] (%p997_p11) }
  0x92   : >> { %1051 = vrot.lane.b32.xlu1 %v2088_v62, %s2179_s23  ;;  %1049 = vrot.lane.b32.xlu0 %v2089_v52, %s2179_s23  ;;  %v2999_v12 = vld [vmem:[%s3257_s4 + $0x30] sm:$0xf] (%p997_p11)  ;;  %v3004_v13 = vld [vmem:[%s3257_s4 + $0x34] sm:$0xf] (%p997_p11) }
  0x93   : >> { %1957 = vmatpush3.bf16.msra.mxu0 %v1854_v54  ;;  %v3009_v14 = vld [vmem:[%s3257_s4 + $0x38] sm:$0xf] (%p997_p11)  ;;  %v3014_v15 = vld [vmem:[%s3257_s4 + $0x3c] sm:$0xf] (%p997_p11)  ;;  %v3019_v16 = vld [vmem:[%s3257_s4 + $0x40] sm:$0xf] (%p997_p11) }
  0x94   : >> { %1958 = vmatprep.subr.bf16.mxu0 %v1861_v43  ;;  %v3024_v19 = vld [vmem:[%s3257_s4 + $0x44] sm:$0xf] (%p997_p11)  ;;  %v3029_v20 = vld [vmem:[%s3257_s4 + $0x48] sm:$0xf] (%p997_p11)  ;;  %v3034_v21 = vld [vmem:[%s3257_s4 + $0x4c] sm:$0xf] (%p997_p11) }
  0x95   : > { %v3039_v22 = vld [vmem:[%s3257_s4 + $0x50] sm:$0xf] (%p997_p11)  ;;  %v3044_v23 = vld [vmem:[%s3257_s4 + $0x54] sm:$0xf] (%p997_p11)  ;;  %v3049_v24 = vld [vmem:[%s3257_s4 + $0x58] sm:$0xf] (%p997_p11) }
  0x96   : > { %v3054_v25 = vld [vmem:[%s3257_s4 + $0x5c] sm:$0xf] (%p997_p11)  ;;  %v3059_v26 = vld [vmem:[%s3257_s4 + $0x60] sm:$0xf] (%p997_p11)  ;;  %v3064_v27 = vld [vmem:[%s3257_s4 + $0x64] sm:$0xf] (%p997_p11) }
  0x97   : >> { %1959 = vmatpush3.bf16.msra.mxu0 %v1853_v47  ;;  %v3069_v28 = vld [vmem:[%s3257_s4 + $0x68] sm:$0xf] (%p997_p11)  ;;  %v3074_v29 = vld [vmem:[%s3257_s4 + $0x6c] sm:$0xf] (%p997_p11)  ;;  %v3079_v30 = vld [vmem:[%s3257_s4 + $0x70] sm:$0xf] (%p997_p11) }
  0x98   : >> { %1960 = vmatprep.subr.bf16.mxu0 %v1860_v61  ;;  %v3084_v31 = vld [vmem:[%s3257_s4 + $0x74] sm:$0xf] (%p997_p11)  ;;  %v3089_v32 = vld [vmem:[%s3257_s4 + $0x78] sm:$0xf] (%p997_p11)  ;;  %v3094_v33 = vld [vmem:[%s3257_s4 + $0x7c] sm:$0xf] (%p997_p11) }
  0x99   : > { %v3099_v34 = vld [vmem:[%s3257_s4 + $0x80] sm:$0xf] (%p997_p11)  ;;  %v3104_v35 = vld [vmem:[%s3257_s4 + $0x84] sm:$0xf] (%p997_p11)  ;;  %v3109_v36 = vld [vmem:[%s3257_s4 + $0x88] sm:$0xf] (%p997_p11) }
  0x9b   : >> { %1961 = vmatpush3.bf16.msra.mxu0 %v1852_v49 }
  0x9c   : >> { %1962 = vmatprep.subr.bf16.mxu0 %v1859_v38 }
  0x9f   : >> { %1963 = vmatpush3.bf16.msra.mxu0 %v1851_v46 }
  0xa0   : >> { %1964 = vmatprep.subr.bf16.mxu0 %v1858_v0 }
  0xa3   : >> { %1965 = vmatpush3.bf16.msra.mxu0 %v1850_v58 }
  0xa4   : >> { %1966 = vmatprep.subr.bf16.mxu0 %v1857_v41 }
  0xa7   : >> { %1967 = vmatpush3.bf16.msra.mxu0 %v1849_v50 }
 0x100   : >> { %v1040_v53 = vpop.permute.xlu1 %1039  ;;  %v1038_v60 = vpop.permute.xlu0 %1037 }
 0x101   : >> { %v1059_v1 = vsel %vm1053_vm9, %v2090_v57, %v1040_v53  ;;  %v1056_v55 = vsel %vm1053_vm9, %v2091_v39, %v1038_v60  ;;  %v3283_v53 = vld [vmem:[#allocation12_spill] sm:$0xff] }
 0x104   : >> { %v1052_v63 = vpop.permute.xlu1 %1051  ;;  %v1050_v40 = vpop.permute.xlu0 %1049 }
 0x105   : >> { %v1064_v48 = vsel %vm1060_vm10, %v1059_v1, %v1052_v63  ;;  %v1062_v18 = vsel %vm1060_vm10, %v1056_v55, %v1050_v40  ;;  %v3284_v55 = vld [vmem:[#allocation13_spill] sm:$0xff] }
 0x106   : >> { %v1072_v62 = vshll.u32 %v1064_v48, 16  ;;  %v1082_v52 = vrot.slane %v1064_v48, 1  ;;  %v1068_v56 = vshll.u32 %v1062_v18, 16  ;;  %v1081_v59 = vrot.slane %v1062_v18, 1 }
 0x107   : >> { %v1066_v45 = vshrl.u32 %v1062_v18, 16 }
 0x108   : >> { %v1070_v2 = vrot.slane %v1068_v56, 1  ;;  %v1083_v51 = vsel %vm1080_vm11, %v1081_v59, %v1082_v52  ;;  %v1074_v54 = vrot.slane %v1072_v62, 1 }
 0x109   : >> { %1084 = vrot.lane.b32.xlu1 %v1083_v51, %s2179_s23  ;;  %s3126_s23 = smov (%p997_p11), 0  }
 0x10a   : >> { %v1071_v43 = vor.u32 %v1070_v2, %v1066_v45 }
 0x10c   : >> { %v1075_v47 = vsel %vm1065_vm12, %v1071_v43, %v1074_v54 }
 0x10d   : >> { %1076 = vrot.lane.b32.xlu0 %v1075_v47, %s2181_s29 }
 0x17b   : >> { %v1085_v61 = vpop.permute.xlu1 %1084 }
 0x17c   : >> { %2007 = vmatmul.mubr.msk.bf16.vlgmr.msra.gmra.mxu1 %vm1053_vm9, %v1085_v61 }
 0x17f   : >> { %v1077_v49 = vpop.permute.xlu0 %1076 }
 0x180   : >> { %v1091_v38 = vsel %vm1060_vm10, %v1077_v49, %v1085_v61  ;;  %v1088_v46 = vsel %vm1086_vm13, %v1062_v18, %v1077_v49  ;;  %v2939_v49 = vld [vmem:[%s3257_s4] sm:$0xf] (%p997_p11) }
 0x181   : >> { %1235 = vmatprep.mubr.bf16.mxu0 %v1091_v38  ;;  %v2944_v38 = vld [vmem:[%s3257_s4 + $0x4] sm:$0xf] (%p997_p11) }
 0x182   : >> { %1236 = vmatmul.mubr.bf16.vlgmr.msra.gmra.mxu0 %v1088_v46  ;;  %v2949_v46 = vld [vmem:[%s3257_s4 + $0x8] sm:$0xf] (%p997_p11) }
 0x23c   : >> { %v1278_v0 = vpop.f32.mrf.mxu1 }
 0x23e   : >> { %v2008_v17 = vpop.f32.mrf.mxu1 }
 0x23f   : > { %v3114_v17 = vld [vmem:[%s3257_s4 + $0x8c] sm:$0xf] (%p997_p11) }
 0x240   : >> { %v1281_v58 = vpop.f32.mrf.mxu1 }
 0x242   : >> { %v1968_v42 = vpop.f32.mrf.mxu0  ;;  %v2009_v3 = vpop.f32.mrf.mxu1 }
 0x244   : >> { %v1969_v41 = vpop.f32.mrf.mxu0 }
 0x245   : >> { %v1970_v37 = vadd.f32 %v1969_v41, %v1968_v42  ;;  %v3124_v42 = vld [vmem:[%s3259_s6] ss:$0 sm:$0xff] (%p997_p11) }
 0x246   : >> { %v1971_v44 = vpop.f32.mrf.mxu0 }
 0x247   : >> { %v1279_v50 = vadd.f32 %v1970_v37, %v1278_v0  ;;  %v2954_v0 = vld [vmem:[%s3257_s4 + $0xc] sm:$0xf] (%p997_p11) }
 0x248   : >> { %v1972_v57 = vpop.f32.mrf.mxu0 }
 0x249   : >> { %v1291_v60 = vmul.f32 %v3283_v53, %v1279_v50  ;;  %v1973_v39 = vadd.f32 %v1972_v57, %v1971_v44 }
 0x24b   : >> { %v1282_v1 = vadd.f32 %v1973_v39, %v1281_v58  ;;  %v1299_v63 = vadd.f32 %v3284_v55, %v1291_v60  ;;  %v3119_v58 = vld [vmem:[%s3258_s5] ss:$0 sm:$0xff] (%p997_p11) }
 0x24d   : >> { %v1292_v40 = vmul.f32 %v3283_v53, %v1282_v1  ;;  %v1301_v18 = vmax.f32 %v1299_v63, 0.0 }
 0x24f   : >> { %v1300_v48 = vadd.f32 %v3284_v55, %v1292_v40 }
 0x251   : >> { %v1302_v62 = vmax.f32 %v1300_v48, 0.0 }
 0x253   : >> { %v1303_v52 = vpack.c.bf16 %v1302_v62, %v1301_v18 }
 0x255   : >> { %v1305_v56 = vshrl.u32 %v1303_v52, 16  ;;  %v1308_v45 = vshll.u32 %v1303_v52, 16 }
 0x257   : >> { %v1307_v59 = vrot.slane %v1305_v56, 7 }
 0x259   : >> { %v1310_v2 = vor.u32 %v1308_v45, %v1307_v59  ;;  %v1316_v51 = vsel %vm1314_vm15, %v1307_v59, 0 }
 0x25a   : >> { %v1872_v54 = vcombine.low %v1316_v51, %v1316_v51  ;;  %999 = sbr.rel (!%p997_p11) target bundleno = 135 (0x87), region = 107 }
 0x25b   : >> { %v1315_v43 = vsel %vm1314_vm15, 0, %v1310_v2 }
 0x25c   : >> { %v1870_v47 = vcombine.low %v1315_v43, %v1315_v43  ;;  %v1871_v61 = vcombine.high %v1315_v43, %v1315_v43  ;;  %1875 = vst.msk [vmem:[%s1744_s9 + $0x14] sm:$0x1] %vm281_vm1, %v1872_v54 }
 0x25e   : >> { %1873 = vst.msk [vmem:[%s1744_s9 + $0xc] sm:$0xf] %vm278_vm0, %v1870_v47  ;;  %1874 = vst.msk [vmem:[%s1744_s9 + $0x10] sm:$0xf] %vm278_vm0, %v1871_v61 }
 0x25f LB: >> { %s1950_s29 = smul.u32 12, %s2174_s23  ;;  %v1904_v37 = vcombine.low %v3089_v32, %v3094_v33  ;;  %v1896_v44 = vcombine.low %v3009_v14, %v3014_v15  ;;  %v1903_v50 = vcombine.low %v3079_v30, %v3084_v31  ;;  %s2182_s9 = smov 32   ;;  %v1895_v60 = vcombine.low %v2999_v12, %v3004_v13  ;;  %s2174_s23 = sphi %s3126_s23, %s1376_s23  }
 0x260   : >> { %v2183_v39 = vmov 0.0   ;;  %v1906_v1 = vcombine.low %v3109_v36, %v3114_v17  ;;  %v1902_v55 = vcombine.low %v3069_v28, %v3074_v29  ;;  %s2184_s13 = smov 64   ;;  %v1905_v63 = vcombine.low %v3099_v34, %v3104_v35  ;;  %s2186_s14 = smov 96  }
 0x261   : >> { %s3132_s19 = scalar_lea.vmem [#allocation3], %s1950_s29  ;;  %1977 = vmatprep.subr.bf16.mxu0 %v1904_v37  ;;  %2010 = vmatprep.subr.bf16.mxu1 %v2183_v39  ;;  %vm2185_vm0 = vmmov 0   ;;  %v1894_v40 = vcombine.low %v2989_v10, %v2994_v11  ;;  %v1901_v48 = vcombine.low %v3059_v26, %v3064_v27  ;;  %v1893_v18 = vcombine.low %v2979_v8, %v2984_v9  ;;  %s1910_s16 = sshll.u32 %s2174_s23, 4 }
 0x262   : >> { %1978 = vmatpush3.bf16.msra.mxu0 %v1896_v44  ;;  %2011 = vmatpush3.bf16.msra.mxu1 %v1906_v1  ;;  %v1900_v62 = vcombine.low %v3049_v24, %v3054_v25  ;;  %v1892_v52 = vcombine.low %v2969_v6, %v2974_v7  ;;  %v1899_v56 = vcombine.low %v3039_v22, %v3044_v23  ;;  %s1678_s21 = scalar_lea.vmem %s2694_s17, %s1910_s16  ;;  %s1685_s20 = scalar_lea.vmem %s271_s18, %s1910_s16 [#allocation4] }
 0x263   : >> { %1979 = vmatprep.subr.bf16.mxu0 %v1903_v50  ;;  %2014 = vmatprep.mubr.msk.bf16.mxu1 %vm2185_vm0, %v2183_v39  ;;  %v1891_v59 = vcombine.low %v2959_v4, %v2964_v5  ;;  %v1898_v45 = vcombine.low %v3029_v20, %v3034_v21  ;;  %v1890_v2 = vcombine.low %v2949_v46, %v2954_v0  ;;  %s1376_s23 = sadd.s32 1, %s2174_s23  }
 0x264   : >> { %2012 = vmatprep.subr.bf16.mxu1 %v2183_v39  ;;  %v1897_v51 = vcombine.low %v3019_v16, %v3024_v19  ;;  %v1889_v54 = vcombine.low %v2939_v49, %v2944_v38  ;;  %p1373_p12 = scmp.ge.s32.totalorder %s1376_s23, 16  }
 0x265   : >> { %v2092_v3 = vld [vmem:[%s3132_s19 + $0x14] ss:$0 sps:$4 sm:$0x11]   ;;  %v2093_v41 = vld [vmem:[%s3132_s19 + $0xc] sm:$0xff]   ;;  %v2095_v53 = vld [vmem:[%s3132_s19 + $0x18] sm:$0xff]   ;;  %s1951_s22 = sshll.u32 (%p1373_p12), %s2251_s28, 12 }
 0x266   : >> { %1415 = vrot.lane.b32.xlu1 %v2092_v3, %s2182_s9  ;;  %1413 = vrot.lane.b32.xlu0 %v2093_v41, %s2182_s9  ;;  %v2094_v57 = vld [vmem:[%s3132_s19 + $0x20] ss:$0 sps:$4 sm:$0x11]   ;;  %v2096_v43 = vld [vmem:[%s3132_s19 + $0x8] ss:$0 sps:$4 sm:$0x11]   ;;  %s3205_s9 = scalar_lea.hbm (%p1373_p12), %s3260_s7, %s1951_s22 }
 0x267   : >> { %1980 = vmatpush3.bf16.msra.mxu0 %v1895_v60  ;;  %2013 = vmatpush3.bf16.msra.mxu1 %v1905_v63  ;;  %v2097_v3 = vld [vmem:[%s3132_s19] sm:$0xff]   ;;  %s3213_s23 = scalar_lea.sflag (%p1373_p12), [#allocation5], %s269_s15  ;;  %s2187_s28 = smov (%p1373_p12), [#allocation4]  }
 0x268   : >> { %1981 = vmatprep.subr.bf16.mxu0 %v1902_v55 }
 0x26a   : >> { %1427 = vrot.lane.b32.xlu1 %v2094_v57, %s2184_s13  ;;  %1425 = vrot.lane.b32.xlu0 %v2095_v53, %s2184_s13 }
 0x26b   : >> { %1982 = vmatpush3.bf16.msra.mxu0 %v1894_v40 }
 0x26c   : >> { %1983 = vmatprep.subr.bf16.mxu0 %v1901_v48 }
 0x26f   : >> { %1984 = vmatpush3.bf16.msra.mxu0 %v1893_v18 }
 0x270   : >> { %1985 = vmatprep.subr.bf16.mxu0 %v1900_v62 }
 0x273   : >> { %1986 = vmatpush3.bf16.msra.mxu0 %v1892_v52 }
 0x274   : >> { %1987 = vmatprep.subr.bf16.mxu0 %v1899_v56 }
 0x277   : >> { %1988 = vmatpush3.bf16.msra.mxu0 %v1891_v59 }
 0x278   : >> { %1989 = vmatprep.subr.bf16.mxu0 %v1898_v45 }
 0x27b   : >> { %1990 = vmatpush3.bf16.msra.mxu0 %v1890_v2 }
 0x27c   : >> { %1991 = vmatprep.subr.bf16.mxu0 %v1897_v51 }
 0x27f   : >> { %1992 = vmatpush3.bf16.msra.mxu0 %v1889_v54 }
 0x2d8   : >> { %v1416_v47 = vpop.permute.xlu1 %1415  ;;  %v1414_v61 = vpop.permute.xlu0 %1413 }
 0x2d9   : >> { %v1435_v41 = vsel %vm1053_vm9, %v2096_v43, %v1416_v47  ;;  %v1432_v37 = vsel %vm1053_vm9, %v2097_v3, %v1414_v61 }
 0x2dc   : >> { %v1428_v44 = vpop.permute.xlu1 %1427  ;;  %v1426_v50 = vpop.permute.xlu0 %1425 }
 0x2dd   : >> { %v1440_v57 = vsel %vm1060_vm10, %v1435_v41, %v1428_v44  ;;  %v1438_v53 = vsel %vm1060_vm10, %v1432_v37, %v1426_v50 }
 0x2de   : >> { %v1448_v60 = vshll.u32 %v1440_v57, 16  ;;  %v1458_v39 = vrot.slane %v1440_v57, 1  ;;  %v1444_v1 = vshll.u32 %v1438_v53, 16  ;;  %v1457_v55 = vrot.slane %v1438_v53, 1 }
 0x2df   : >> { %v1442_v63 = vshrl.u32 %v1438_v53, 16 }
 0x2e0   : >> { %v1446_v40 = vrot.slane %v1444_v1, 1  ;;  %v1459_v48 = vsel %vm1080_vm11, %v1457_v55, %v1458_v39  ;;  %v1450_v18 = vrot.slane %v1448_v60, 1  ;;  %v1679_v60 = vld [vmem:[%s1678_s21] sm:$0xff] }
 0x2e1   : >> { %1460 = vrot.lane.b32.xlu1 %v1459_v48, %s2184_s13  ;;  %s1702_s13 = sshll.u32 (%p1373_p12), %s271_s18, 4  ;;  %s3209_s13 = int_to_ptr.vmem [resolvable:$true] %s1702_s13 }
 0x2e2   : >> { %v1447_v62 = vor.u32 %v1446_v40, %v1442_v63  ;;  %v1680_v40 = vld [vmem:[%s1678_s21 + $0x8] sm:$0xff]  ;;  %s2098_s17 = scalar_lea.vmem (%p1373_p12), %s3209_s13, 4096 }
 0x2e3   : > { %p2099_p13 = scmp.ne.s32.totalorder (%p1373_p12), %s3209_s13, %s2098_s17 }
 0x2e4   : >> { %v1451_v52 = vsel %vm1065_vm12, %v1447_v62, %v1450_v18 }
 0x2e5   : >> { %1452 = vrot.lane.b32.xlu0 %v1451_v52, %s2186_s14  ;;  %p2100_p0 = pnand (%p1373_p12), %p2099_p13, %p2268_p5  ;;  %s2102_s14 = sshll.u32 (%p1373_p12), %s2187_s28, 4  ;;  %s2103_s14 = int_to_ptr.vmem [resolvable:$false] %s2102_s14 }
 0x2e6   : > { %s2104_s16 = scalar_lea.vmem (%p1373_p12), %s2103_s14, 8192  ;;  %p2105_p2 = scmp.lt.s32.totalorder (%p1373_p12), %s3209_s13, %s2103_s14 }
 0x2e7   : > { %p2101_p1 = pneg (%p1373_p12), %p2100_p0  ;;  %p2106_p3 = scmp.lt.s32.totalorder (%p1373_p12), %s2104_s16, %s2098_s17 }
 0x2e9   : > { %p2107_p4 = por (%p1373_p12), %p2106_p3, %p2105_p2 }
 0x2eb   : > { %p2108_p7 = pnand (%p1373_p12), %p2107_p4, %p2101_p1 }
 0x353   : >> { %v1461_v56 = vpop.permute.xlu1 %1460 }
 0x354   : >> { %2015 = vmatmul.mubr.msk.bf16.vlgmr.msra.gmra.mxu1 %vm1053_vm9, %v1461_v56 }
 0x357   : >> { %v1453_v59 = vpop.permute.xlu0 %1452 }
 0x358   : >> { %v1464_v45 = vsel %vm1086_vm13, %v1438_v53, %v1453_v59  ;;  %v1467_v2 = vsel %vm1060_vm10, %v1453_v59, %v1461_v56 }
 0x359   : >> { %1611 = vmatprep.mubr.bf16.mxu0 %v1467_v2 }
 0x35a   : >> { %1612 = vmatmul.mubr.bf16.vlgmr.msra.gmra.mxu0 %v1464_v45 }
 0x414   : >> { %v1654_v51 = vpop.f32.mrf.mxu1 }
 0x416   : >> { %v2016_v54 = vpop.f32.mrf.mxu1 }
 0x418   : >> { %v1657_v43 = vpop.f32.mrf.mxu1 }
 0x41a   : >> { %v1993_v47 = vpop.f32.mrf.mxu0  ;;  %v2017_v61 = vpop.f32.mrf.mxu1 }
 0x41c   : >> { %v1994_v3 = vpop.f32.mrf.mxu0 }
 0x41d   : >> { %v1995_v41 = vadd.f32 %v1994_v3, %v1993_v47 }
 0x41e   : >> { %v1996_v37 = vpop.f32.mrf.mxu0 }
 0x41f   : >> { %v1655_v44 = vadd.f32 %v1995_v41, %v1654_v51 }
 0x420   : >> { %v1997_v50 = vpop.f32.mrf.mxu0 }
 0x421   : >> { %v1667_v57 = vmul.f32 %v3119_v58, %v1655_v44  ;;  %v1998_v53 = vadd.f32 %v1997_v50, %v1996_v37 }
 0x423   : >> { %v1675_v39 = vadd.f32 %v3124_v42, %v1667_v57  ;;  %v1658_v1 = vadd.f32 %v1998_v53, %v1657_v43 }
 0x425   : >> { %v1681_v55 = vadd.f32 %v1679_v60, %v1675_v39  ;;  %v1668_v63 = vmul.f32 %v3119_v58, %v1658_v1 }
 0x427   : >> { %v1683_v48 = vmax.f32 %v1681_v55, 0.0  ;;  %v1676_v18 = vadd.f32 %v3124_v42, %v1668_v63 }
 0x429   : >> { %1686 = vst.msk [vmem:[%s1685_s20] sm:$0xff] %vm1053_vm9, %v1683_v48  ;;  %v1682_v62 = vadd.f32 %v1680_v40, %v1676_v18  ;;  %1375 = sbr.rel (!%p1373_p12) target bundleno = 607 (0x25f), region = 118 }
 0x42b   : >> { %v1684_v52 = vmax.f32 %v1682_v62, 0.0 }
 0x42d   : >> { %1687 = vst.msk [vmem:[%s1685_s20 + $0x8] sm:$0xff] %vm1053_vm9, %v1684_v52 }
 0x42e   : > { %2111 = shalt.err (!%p2108_p7)
}
 0x42f   : > { %s2112_s15 = scalar_lea.hbm %s3205_s9, 4096  ;;  %s2116_s21 = scalar_lea.hbm %s3260_s7, 8192 }
 0x430   : > { %p2113_p8 = scmp.ne.s32.totalorder %s3205_s9, %s2112_s15  ;;  %p2117_p11 = scmp.lt.s32.totalorder %s3205_s9, %s3260_s7 }
 0x431   : > { %p2118_p12 = scmp.lt.s32.totalorder %s2116_s21, %s2112_s15 }
 0x432   : > { %p2114_p9 = pnand %p2113_p8, %p2268_p5 }
 0x433   : > { %p2119_p13 = por %p2118_p12, %p2117_p11 }
 0x434   : > { %p2115_p10 = pneg %p2114_p9 }
 0x436   : > { %p2120_p0 = pnand %p2119_p13, %p2115_p10 }
 0x438   : > { %2123 = shalt.err (!%p2120_p0)
}
 0x439   : > { %s2188_s29 = smov 128   ;;  %s2189_s19 = smov 8  }
 0x43a   : > { %2018 = dma.vmem_to_hbm [thread:$0]  (%p2268_p5), %s3209_s13, 4096, %s3205_s9, %s3213_s23, %s2188_s29, %s2188_s29, %s2189_s19  }
 0x43b PF: > { %p2024_p1 = scmp.ge.s32.totalorder %s2166_s27, 2  ;;  %s1717_s17 = sand.u32 1, %s2154_s24  }
 0x43c   : > { %s1718_s28 = scalar_lea.sflag [#allocation5], %s1717_s17 }
 0x43d   : > { %p2021_p2 = pnand %p2024_p1, %p2272_p6 }
 0x43f   : > { %p2022_p3 = pneg %p2021_p2 }
 0x441   : > { %2149 = dma.done.wait (%p2022_p3), %s1718_s28, 4096  }
 0x442   : > { %2151 = vsyncadd (%p2022_p3), %s1718_s28, 4294963200  ;;  %p17_p4 = scmp.ge.s32.totalorder %s2255_s30, 4   ;;  %s3285_s24 = smov %s2158_s25 }
 0x443   : > { %s3286_s25 = smov %s2162_s26  ;;  %s3287_s26 = smov %s2266_s10 }
 0x444   : > { %s3288_s27 = smov %s2255_s30  ;;  %19 = sbr.rel (!%p17_p4) target bundleno = 3 (0x3), region = 129 }
 0x449   :  { %1723 = vsyncpa [#allocation5], 1 }
 0x44a   :  { %1725 = vsyncpa [#allocation5 + $0x1], 1 }

</bundles_post_ra>
